<compile_context>
chip_gen: v7x
topology: tpu7x:2x2x1
jax: 0.10.0
libtpu: 0.0.40
codegen_flags: <defaults>
</compile_context>

<pallas_src>
import math
import functools

import jax
import jax.numpy as jnp
from jax import lax
from jax.experimental import pallas as pl
from jax.experimental.pallas import tpu as pltpu

_LANE = 128


# ---------------------------------------------------------------------------
# In-kernel helpers
# ---------------------------------------------------------------------------
def _count_ge(pred, ones_cnt):
    """Row-count of a boolean predicate (tq, S), computed on the MXU.

    Contracts the S axis against a (S, 128) ones block; every output lane
    holds the same count, lane 0 is returned as (tq, 1) f32.  Keeps the hot
    top-k selection loops off the XLU (only 2 XLUs on v6e/v7x).
    """
    cnt = jnp.dot(pred.astype(jnp.bfloat16), ones_cnt,
                  preferred_element_type=jnp.float32)      # (tq, 128)
    return cnt[:, 0:1]                                     # (tq, 1)


def _encode_f32(x):
    """Order-preserving (total order) f32 -> int32 key."""
    int_min = jnp.int32(-(2 ** 31))
    b = pltpu.bitcast(x, jnp.int32)
    return jnp.where(b >= 0, b, int_min - b)


def _decode_key(key):
    """Inverse of _encode_f32 (the map is an involution on its range)."""
    int_min = jnp.int32(-(2 ** 31))
    bits = jnp.where(key >= 0, key, int_min - key)
    return pltpu.bitcast(bits, jnp.float32)


def _kth_largest_bisect(s, row_max, row_min, topk, ones_cnt):
    """Exact k-th largest score per row via bisection on int32 keys.

    Fixed 32 iterations independent of topk; each iteration is one VPU
    compare plus one MXU count.  Returns the threshold, f32 (tq, 1).
    """
    skey = _encode_f32(s)
    lo0 = _encode_f32(row_min)                    # count >= k  (feasible)
    hi0 = _encode_f32(row_max) + jnp.int32(1)     # count <  k  (infeasible)
    kk = jnp.float32(topk)

    def body(_, carry):
        lo, hi = carry
        mid = (lo & hi) + ((lo ^ hi) >> 1)        # overflow-safe floor average
        ge = _count_ge(skey >= mid, ones_cnt) >= kk
        return jnp.where(ge, mid, lo), jnp.where(ge, hi, mid)

    lo, _ = lax.fori_loop(0, 32, body, (lo0, hi0))
    # Decode so `skey` need not stay live past the loop (one fewer (tq, S)
    # i32 buffer at the exp/normalize stage).
    return _decode_key(lo)


def _kth_largest_peel(s, row_max, topk, ones_cnt):
    """Exact k-th largest (WITH multiplicity) by peeling distinct maxima.

    Each iteration removes all copies of the current maximum; the MXU count
    of `s >= m` tells us when the cumulative multiplicity reaches topk, so
    ties at the k-th value are handled exactly like lax.top_k's k-th value.
    """
    neg_inf = jnp.float32(-jnp.inf)
    kk = jnp.float32(topk)
    cur = s
    thr = row_max
    done = jnp.zeros_like(row_max, dtype=jnp.bool_)
    for i in range(topk):
        m = row_max if i == 0 else jnp.max(cur, axis=-1, keepdims=True)
        thr = jnp.where(done, thr, m)
        done = jnp.logical_or(done, _count_ge(s >= m, ones_cnt) >= kk)
        if i + 1 < topk:
            cur = jnp.where(cur >= m, neg_inf, cur)
    return thr


def _attn_probs(q_scaled, k, *, topk, use_bisect, ones_cnt):
    """q_scaled: (tq, E) already scaled; k: (S, E) -> top-k softmax (tq, S)."""
    # Scores on the MXU, contracting E on both sides (no k.T / XLU transpose).
    s = lax.dot_general(q_scaled, k,
                        dimension_numbers=(((1,), (1,)), ((), ())),
                        preferred_element_type=jnp.float32)        # (tq, S)
    S = s.shape[-1]
    row_max = jnp.max(s, axis=-1, keepdims=True)

    if topk >= S:
        masked = s                                                 # keep all
    else:
        if use_bisect:
            row_min = jnp.min(s, axis=-1, keepdims=True)
            thr = _kth_largest_bisect(s, row_max, row_min, topk, ones_cnt)
        else:
            thr = _kth_largest_peel(s, row_max, topk, ones_cnt)
        masked = jnp.where(s >= thr, s, jnp.float32(-jnp.inf))

    p = jnp.exp(masked - row_max)
    denom = jnp.sum(p, axis=-1, keepdims=True)
    # Exact reciprocal keeps us within 1e-5 of the reference softmax.
    return p * pl.reciprocal(denom, approx=False)


# ---------------------------------------------------------------------------
# Kernel
# ---------------------------------------------------------------------------
def _topk_attn_kernel(q_ref, k_ref, v_ref, o_ref, *extra_refs,
                      hb, E, D, softmax_temp, topk, use_bisect, with_weights):
    attn_ref = extra_refs[0] if with_weights else None
    S = k_ref.shape[1]
    # Ones block for MXU-side counting, hoisted once and shared by all heads.
    ones_cnt = jnp.ones((S, _LANE), jnp.bfloat16)

    outs = []
    for h in range(hb):
        # Static lane slices of the head-packed blocks (zero runtime cost).
        q = q_ref[0, :, pl.ds(h * E, E)] * softmax_temp            # (tq, E)
        kh = k_ref[0, :, pl.ds(h * E, E)]                          # (S,  E)
        p = _attn_probs(q, kh, topk=topk, use_bisect=use_bisect,
                        ones_cnt=ones_cnt)                         # (tq, S)
        vh = v_ref[0, :, pl.ds(h * D, D)]                          # (S,  D)
        outs.append(jnp.dot(p.astype(vh.dtype), vh,
                            preferred_element_type=jnp.float32))   # (tq, D)
        if with_weights:
            attn_ref[0, h] = p.astype(attn_ref.dtype)

    out = outs[0] if hb == 1 else jnp.concatenate(outs, axis=-1)   # (tq, hb*D)
    o_ref[0] = out.astype(o_ref.dtype)                             # lane-dense


# ---------------------------------------------------------------------------
# Wrapper
# ---------------------------------------------------------------------------
def _pick_head_block(H, E, D):
    """Smallest divisor hb of H with hb*E and hb*D multiples of 128; else H."""
    for hb in range(1, H):
        if H % hb == 0 and (hb * E) % _LANE == 0 and (hb * D) % _LANE == 0:
            return hb
    return H     # block == full head dim is always a legal BlockSpec


def exact_topk_attention(query, key, value, topk, softmax_temp=None,
                         need_weights=False, q_tile=128):
    """query (B,T,H,E), key (B,S,H,E), value (B,S,H,D) -> ((B,T,H,D), attn?)."""
    B, T, H, E = query.shape
    _, S, _, D = value.shape
    if softmax_temp is None:
        softmax_temp = 1.0 / math.sqrt(E)
    topk = int(min(topk, S))

    # Free reshapes (no HBM traffic): fold heads into the lane dimension so
    # the kernel reads q/k/v in their native memory order and writes a
    # lane-dense (tq, hb*D) output slab.  No transposes anywhere.
    q = query.reshape(B, T, H * E)
    k = key.reshape(B, S, H * E)
    v = value.reshape(B, S, H * D)

    hb = _pick_head_block(H, E, D)
    G = H // hb

    tq = q_tile if T >= q_tile else T
    n_t = pl.cdiv(T, tq)

    # O(topk) max-peel for small k; O(32) exact bisection for larger k.  Both
    # reproduce exact `s >= k-th (with multiplicity)` tie semantics.
    use_bisect = (topk < S) and (topk > 24)

    kernel = functools.partial(
        _topk_attn_kernel, hb=hb, E=E, D=D, softmax_temp=float(softmax_temp),
        topk=topk, use_bisect=use_bisect, with_weights=need_weights)

    in_specs = [
        pl.BlockSpec((1, tq, hb * E), lambda b, g, t: (b, t, g)),
        # K/V block index is constant along the (innermost) t axis -> K/V
        # stay resident across query tiles of the same (batch, head-group).
        pl.BlockSpec((1, S, hb * E), lambda b, g, t: (b, 0, g)),
        pl.BlockSpec((1, S, hb * D), lambda b, g, t: (b, 0, g)),
    ]
    o_spec = pl.BlockSpec((1, tq, hb * D), lambda b, g, t: (b, t, g))

    if need_weights:
        out_shape = (
            jax.ShapeDtypeStruct((B, T, H * D), query.dtype),
            jax.ShapeDtypeStruct((B, H, T, S), query.dtype),   # input dtype
        )
        out_specs = [
            o_spec,
            pl.BlockSpec((1, hb, tq, S), lambda b, g, t: (b, g, t, 0)),
        ]
    else:
        out_shape = jax.ShapeDtypeStruct((B, T, H * D), query.dtype)
        out_specs = o_spec

    isz = jnp.dtype(query.dtype).itemsize

    # Advisory cost estimate so XLA schedules the surrounding ops sensibly.
    bytes_accessed = (B * T * H * E + B * S * H * (E + D) + B * T * H * D) * isz
    if need_weights:
        bytes_accessed += B * H * T * S * isz
    cost = pl.CostEstimate(flops=int(2 * B * H * T * S * (E + D)),
                           transcendentals=int(B * H * T * S),
                           bytes_accessed=int(bytes_accessed))

    # Explicit scoped-VMEM budget: double-buffered I/O blocks plus the live
    # (tq, S) f32/i32 temporaries, with 2x headroom; never below the 32 MiB
    # default and capped at 100 MiB (under v5e/v6e's 128 MiB physical; v7x's
    # 64 MiB physical is handled by keeping tq=128 -- see S-tiling TODO).
    blk = 2 * (tq * hb * E + S * hb * (E + D) + tq * hb * D) * isz
    if need_weights:
        blk += 2 * hb * tq * S * isz
    tmp = 10 * tq * S * 4 + S * _LANE * 2 + tq * _LANE * 4
    vmem_limit = int(min(100 * 2 ** 20, max(32 * 2 ** 20, 2 * (blk + tmp))))

    res = pl.pallas_call(
        kernel,
        out_shape=out_shape,
        grid_spec=pltpu.PrefetchScalarGridSpec(
            num_scalar_prefetch=0,
            grid=(B, G, n_t),
            in_specs=in_specs,
            out_specs=out_specs,
        ),
        compiler_params=pltpu.CompilerParams(
            # No grid axis is an accumulator (output block index varies with
            # every axis), so all three can be megacore-sharded on v7x.
            dimension_semantics=("parallel", "parallel", "parallel"),
            vmem_limit_bytes=vmem_limit),
        cost_estimate=cost,
    )(q, k, v)

    if need_weights:
        out_flat, attn = res
    else:
        out_flat, attn = res, None

    return out_flat.reshape(B, T, H, D), attn


# ---------------------------------------------------------------------------
# Pure-JAX reference (mirrors the PyTorch module; keeps all ties >= k-th
# value, which is the documented semantics of this kernel as well).
# ---------------------------------------------------------------------------
def _reference(query, key, value, topk, softmax_temp=None):
    B, T, H, E = query.shape
    _, S, _, D = value.shape
    if softmax_temp is None:
        softmax_temp = 1.0 / math.sqrt(E)
    topk = min(topk, S)
    qs = query * softmax_temp
    QK = jnp.einsum('bthe,bshe->bhts', qs, key)
    kth = lax.top_k(QK, topk)[0][..., -1:]
    QK = jnp.where(QK >= kth, QK, -jnp.inf)
    attn = jax.nn.softmax(QK, axis=-1)
    out = jnp.einsum('bhts,bshd->bthd', attn, value)
    return out, attn


if __name__ == "__main__":
    # ---- Config 1: tiny shapes, peel path, tied scores, weights returned ----
    B, T, S, H, E, D = 2, 8, 8, 4, 32, 32
    TOPK = 4
    rng = jax.random.PRNGKey(0)
    kq, kk_, kv = jax.random.split(rng, 3)
    query = jax.random.normal(kq, (B, T, H, E), dtype=jnp.float32)
    key_ = jax.random.normal(kk_, (B, S, H, E), dtype=jnp.float32)
    value = jax.random.normal(kv, (B, S, H, D), dtype=jnp.float32)
    # Duplicate two keys so score ties can straddle the top-k boundary:
    # exercises the exact k-th-with-multiplicity tie handling.
    key_ = key_.at[:, 1].set(key_[:, 0])
    key_ = key_.at[:, 2].set(key_[:, 0])

    out, attn = exact_topk_attention(query, key_, value, TOPK,
                                     need_weights=True)
    out = jax.block_until_ready(out)
    attn = jax.block_until_ready(attn)
    ref_out, ref_attn = _reference(query, key_, value, TOPK)
    assert jnp.allclose(out, ref_out, atol=1e-5, rtol=1e-5), "output mismatch"
    assert jnp.allclose(attn, ref_attn, atol=1e-5, rtol=1e-5), "attn mismatch"

    # ---- Config 2: bisection path (topk > 24), head-block fallback hb=H ----
    B2, T2, S2, H2, E2, D2 = 1, 16, 128, 2, 32, 32
    TOPK2 = 40
    rng2 = jax.random.PRNGKey(0)
    kq2, kk2, kv2 = jax.random.split(rng2, 3)
    q2 = jax.random.normal(kq2, (B2, T2, H2, E2), dtype=jnp.float32)
    k2 = jax.random.normal(kk2, (B2, S2, H2, E2), dtype=jnp.float32)
    v2 = jax.random.normal(kv2, (B2, S2, H2, D2), dtype=jnp.float32)
    out2, attn2 = exact_topk_attention(q2, k2, v2, TOPK2, need_weights=False)
    out2 = jax.block_until_ready(out2)
    assert attn2 is None
    ref_out2, _ = _reference(q2, k2, v2, TOPK2)
    assert jnp.allclose(out2, ref_out2, atol=1e-5, rtol=1e-5), "output2 mismatch"

    # ---- Config 3: multiple query tiles and head groups (hb=1, E=D=128) ----
    B3, T3, S3, H3, E3, D3 = 1, 256, 64, 2, 128, 128
    TOPK3 = 8
    rng3 = jax.random.PRNGKey(0)
    kq3, kk3, kv3 = jax.random.split(rng3, 3)
    q3 = jax.random.normal(kq3, (B3, T3, H3, E3), dtype=jnp.float32)
    k3 = jax.random.normal(kk3, (B3, S3, H3, E3), dtype=jnp.float32)
    v3 = jax.random.normal(kv3, (B3, S3, H3, D3), dtype=jnp.float32)
    out3, _ = exact_topk_attention(q3, k3, v3, TOPK3, need_weights=False)
    out3 = jax.block_until_ready(out3)
    ref_out3, _ = _reference(q3, k3, v3, TOPK3)
    assert jnp.allclose(out3, ref_out3, atol=1e-5, rtol=1e-5), "output3 mismatch"

    print("KERNEL_OK")
</pallas_src>

<mosaic_0001>
module attributes {stable_mosaic.version = 11 : i64} {
  func.func @_topk_attn_kernel(%arg0: i32, %arg1: i32, %arg2: i32, %arg3: memref<1x8x128xf32, #tpu.memory_space<vmem>>, %arg4: memref<1x8x128xf32, #tpu.memory_space<vmem>>, %arg5: memref<1x8x128xf32, #tpu.memory_space<vmem>>, %arg6: memref<1x8x128xf32, #tpu.memory_space<vmem>>, %arg7: memref<1x4x8x8xf32, #tpu.memory_space<vmem>>) attributes {dimension_semantics = [#tpu.dimension_semantics<parallel>, #tpu.dimension_semantics<parallel>, #tpu.dimension_semantics<parallel>], iteration_bounds = array<i64: 2, 1, 1>, scalar_prefetch = 0 : i64, scratch_operands = 0 : i64, tpu.core_type = #tpu.core_type<tc>, window_params = [{transform_indices = @transform_0, window_bounds = array<i64: 1, 8, 128>}, {transform_indices = @transform_1, window_bounds = array<i64: 1, 8, 128>}, {transform_indices = @transform_2, window_bounds = array<i64: 1, 8, 128>}, {transform_indices = @transform_3, window_bounds = array<i64: 1, 8, 128>}, {transform_indices = @transform_4, window_bounds = array<i64: 1, 4, 8, 8>}]} {
    %cst = arith.constant 1.000000e+00 : bf16
    %0 = vector.broadcast %cst : bf16 to vector<8x128xbf16>
    %c0 = arith.constant 0 : index
    %c0_0 = arith.constant 0 : index
    %c0_1 = arith.constant 0 : index
    %1 = vector.load %arg3[%c0, %c0_0, %c0_1] : memref<1x8x128xf32, #tpu.memory_space<vmem>>, vector<1x8x32xf32>
    %2 = vector.shape_cast %1 : vector<1x8x32xf32> to vector<8x32xf32>
    %cst_2 = arith.constant 0.176776692 : f32
    %3 = vector.broadcast %cst_2 : f32 to vector<8x32xf32>
    %4 = arith.mulf %2, %3 : vector<8x32xf32>
    %c0_3 = arith.constant 0 : index
    %c0_4 = arith.constant 0 : index
    %c0_5 = arith.constant 0 : index
    %5 = vector.load %arg4[%c0_3, %c0_4, %c0_5] : memref<1x8x128xf32, #tpu.memory_space<vmem>>, vector<1x8x32xf32>
    %6 = vector.shape_cast %5 : vector<1x8x32xf32> to vector<8x32xf32>
    %cst_6 = arith.constant dense<0.000000e+00> : vector<8x8xf32>
    %7 = tpu.matmul %4, %6, %cst_6 {dimension_numbers = #tpu.dot_dimension_numbers<[1], [1], [0], [0], [0, 0, 1, 0], [], []>} : vector<8x32xf32>, vector<8x32xf32>, vector<8x8xf32> -> vector<8x8xf32>
    %cst_7 = arith.constant dense<0xFF800000> : vector<8xf32>
    %8 = vector.multi_reduction <maximumf>, %7, %cst_7 [1] : vector<8x8xf32> to vector<8xf32>
    %9 = vector.shape_cast %8 : vector<8xf32> to vector<8x1xf32>
    %false = arith.constant false
    %10 = vector.broadcast %false : i1 to vector<8x1xi1>
    %11 = arith.select %10, %9, %9 : vector<8x1xi1>, vector<8x1xf32>
    %12 = vector.broadcast %9 : vector<8x1xf32> to vector<8x8xf32>
    %13 = arith.cmpf oge, %7, %12 : vector<8x8xf32>
    %14 = arith.extui %13 : vector<8x8xi1> to vector<8x8xi32>
    %15 = arith.sitofp %14 : vector<8x8xi32> to vector<8x8xf32>
    %16 = arith.truncf %15 : vector<8x8xf32> to vector<8x8xbf16>
    %cst_8 = arith.constant dense<0.000000e+00> : vector<8x128xf32>
    %17 = tpu.matmul %16, %0, %cst_8 {dimension_numbers = #tpu.dot_dimension_numbers<[1], [0], [0], [1], [0, 0, 1, 1], [], []>} : vector<8x8xbf16>, vector<8x128xbf16>, vector<8x128xf32> -> vector<8x128xf32>
    %18 = vector.extract_strided_slice %17 {offsets = [0, 0], sizes = [8, 1], strides = [1, 1]} : vector<8x128xf32> to vector<8x1xf32>
    %cst_9 = arith.constant 4.000000e+00 : f32
    %19 = vector.broadcast %cst_9 : f32 to vector<8x1xf32>
    %20 = arith.cmpf oge, %18, %19 : vector<8x1xf32>
    %21 = arith.ori %10, %20 : vector<8x1xi1>
    %22 = vector.broadcast %9 : vector<8x1xf32> to vector<8x8xf32>
    %23 = arith.cmpf oge, %7, %22 : vector<8x8xf32>
    %cst_10 = arith.constant 0xFF800000 : f32
    %24 = vector.broadcast %cst_10 : f32 to vector<8x8xf32>
    %25 = arith.select %23, %24, %7 : vector<8x8xi1>, vector<8x8xf32>
    %cst_11 = arith.constant dense<0xFF800000> : vector<8xf32>
    %26 = vector.multi_reduction <maximumf>, %25, %cst_11 [1] : vector<8x8xf32> to vector<8xf32>
    %27 = vector.shape_cast %26 : vector<8xf32> to vector<8x1xf32>
    %28 = arith.select %21, %11, %27 : vector<8x1xi1>, vector<8x1xf32>
    %29 = vector.broadcast %27 : vector<8x1xf32> to vector<8x8xf32>
    %30 = arith.cmpf oge, %7, %29 : vector<8x8xf32>
    %31 = arith.extui %30 : vector<8x8xi1> to vector<8x8xi32>
    %32 = arith.sitofp %31 : vector<8x8xi32> to vector<8x8xf32>
    %33 = arith.truncf %32 : vector<8x8xf32> to vector<8x8xbf16>
    %cst_12 = arith.constant dense<0.000000e+00> : vector<8x128xf32>
    %34 = tpu.matmul %33, %0, %cst_12 {dimension_numbers = #tpu.dot_dimension_numbers<[1], [0], [0], [1], [0, 0, 1, 1], [], []>} : vector<8x8xbf16>, vector<8x128xbf16>, vector<8x128xf32> -> vector<8x128xf32>
    %35 = vector.extract_strided_slice %34 {offsets = [0, 0], sizes = [8, 1], strides = [1, 1]} : vector<8x128xf32> to vector<8x1xf32>
    %cst_13 = arith.constant 4.000000e+00 : f32
    %36 = vector.broadcast %cst_13 : f32 to vector<8x1xf32>
    %37 = arith.cmpf oge, %35, %36 : vector<8x1xf32>
    %38 = arith.ori %21, %37 : vector<8x1xi1>
    %39 = vector.broadcast %27 : vector<8x1xf32> to vector<8x8xf32>
    %40 = arith.cmpf oge, %25, %39 : vector<8x8xf32>
    %cst_14 = arith.constant 0xFF800000 : f32
    %41 = vector.broadcast %cst_14 : f32 to vector<8x8xf32>
    %42 = arith.select %40, %41, %25 : vector<8x8xi1>, vector<8x8xf32>
    %cst_15 = arith.constant dense<0xFF800000> : vector<8xf32>
    %43 = vector.multi_reduction <maximumf>, %42, %cst_15 [1] : vector<8x8xf32> to vector<8xf32>
    %44 = vector.shape_cast %43 : vector<8xf32> to vector<8x1xf32>
    %45 = arith.select %38, %28, %44 : vector<8x1xi1>, vector<8x1xf32>
    %46 = vector.broadcast %44 : vector<8x1xf32> to vector<8x8xf32>
    %47 = arith.cmpf oge, %7, %46 : vector<8x8xf32>
    %48 = arith.extui %47 : vector<8x8xi1> to vector<8x8xi32>
    %49 = arith.sitofp %48 : vector<8x8xi32> to vector<8x8xf32>
    %50 = arith.truncf %49 : vector<8x8xf32> to vector<8x8xbf16>
    %cst_16 = arith.constant dense<0.000000e+00> : vector<8x128xf32>
    %51 = tpu.matmul %50, %0, %cst_16 {dimension_numbers = #tpu.dot_dimension_numbers<[1], [0], [0], [1], [0, 0, 1, 1], [], []>} : vector<8x8xbf16>, vector<8x128xbf16>, vector<8x128xf32> -> vector<8x128xf32>
    %52 = vector.extract_strided_slice %51 {offsets = [0, 0], sizes = [8, 1], strides = [1, 1]} : vector<8x128xf32> to vector<8x1xf32>
    %cst_17 = arith.constant 4.000000e+00 : f32
    %53 = vector.broadcast %cst_17 : f32 to vector<8x1xf32>
    %54 = arith.cmpf oge, %52, %53 : vector<8x1xf32>
    %55 = arith.ori %38, %54 : vector<8x1xi1>
    %56 = vector.broadcast %44 : vector<8x1xf32> to vector<8x8xf32>
    %57 = arith.cmpf oge, %42, %56 : vector<8x8xf32>
    %cst_18 = arith.constant 0xFF800000 : f32
    %58 = vector.broadcast %cst_18 : f32 to vector<8x8xf32>
    %59 = arith.select %57, %58, %42 : vector<8x8xi1>, vector<8x8xf32>
    %cst_19 = arith.constant dense<0xFF800000> : vector<8xf32>
    %60 = vector.multi_reduction <maximumf>, %59, %cst_19 [1] : vector<8x8xf32> to vector<8xf32>
    %61 = vector.shape_cast %60 : vector<8xf32> to vector<8x1xf32>
    %62 = arith.select %55, %45, %61 : vector<8x1xi1>, vector<8x1xf32>
    %63 = vector.broadcast %62 : vector<8x1xf32> to vector<8x8xf32>
    %64 = arith.cmpf oge, %7, %63 : vector<8x8xf32>
    %cst_20 = arith.constant 0xFF800000 : f32
    %65 = vector.broadcast %cst_20 : f32 to vector<8x8xf32>
    %66 = arith.select %64, %7, %65 : vector<8x8xi1>, vector<8x8xf32>
    %67 = vector.broadcast %9 : vector<8x1xf32> to vector<8x8xf32>
    %68 = arith.subf %66, %67 : vector<8x8xf32>
    %69 = math.exp %68 : vector<8x8xf32>
    %cst_21 = arith.constant dense<0.000000e+00> : vector<8xf32>
    %70 = vector.multi_reduction <add>, %69, %cst_21 [1] : vector<8x8xf32> to vector<8xf32>
    %71 = vector.shape_cast %70 : vector<8xf32> to vector<8x1xf32>
    %72 = tpu.reciprocal %71 : vector<8x1xf32> -> vector<8x1xf32>
    %73 = vector.broadcast %72 : vector<8x1xf32> to vector<8x8xf32>
    %74 = arith.mulf %69, %73 : vector<8x8xf32>
    %c0_22 = arith.constant 0 : index
    %c0_23 = arith.constant 0 : index
    %c0_24 = arith.constant 0 : index
    %75 = vector.load %arg5[%c0_22, %c0_23, %c0_24] : memref<1x8x128xf32, #tpu.memory_space<vmem>>, vector<1x8x32xf32>
    %76 = vector.shape_cast %75 : vector<1x8x32xf32> to vector<8x32xf32>
    %cst_25 = arith.constant dense<0.000000e+00> : vector<8x32xf32>
    %77 = tpu.matmul %74, %76, %cst_25 {dimension_numbers = #tpu.dot_dimension_numbers<[1], [0], [0], [1], [0, 0, 1, 1], [], []>} : vector<8x8xf32>, vector<8x32xf32>, vector<8x32xf32> -> vector<8x32xf32>
    %c0_26 = arith.constant 0 : index
    %c0_27 = arith.constant 0 : index
    %c0_28 = arith.constant 0 : index
    %c0_29 = arith.constant 0 : index
    %78 = vector.load %arg7[%c0_26, %c0_27, %c0_28, %c0_29] : memref<1x4x8x8xf32, #tpu.memory_space<vmem>>, vector<1x1x8x8xf32>
    %79 = vector.shape_cast %78 : vector<1x1x8x8xf32> to vector<8x8xf32>
    %80 = vector.shape_cast %74 : vector<8x8xf32> to vector<1x1x8x8xf32>
    tpu.vector_store %arg7[%c0_26, %c0_27, %c0_28, %c0_29], %80 {strides = array<i32>} : memref<1x4x8x8xf32, #tpu.memory_space<vmem>>, vector<1x1x8x8xf32>,
    %c0_30 = arith.constant 0 : index
    %c0_31 = arith.constant 0 : index
    %c32 = arith.constant 32 : index
    %81 = vector.load %arg3[%c0_30, %c0_31, %c32] : memref<1x8x128xf32, #tpu.memory_space<vmem>>, vector<1x8x32xf32>
    %82 = vector.shape_cast %81 : vector<1x8x32xf32> to vector<8x32xf32>
    %cst_32 = arith.constant 0.176776692 : f32
    %83 = vector.broadcast %cst_32 : f32 to vector<8x32xf32>
    %84 = arith.mulf %82, %83 : vector<8x32xf32>
    %c0_33 = arith.constant 0 : index
    %c0_34 = arith.constant 0 : index
    %c32_35 = arith.constant 32 : index
    %85 = vector.load %arg4[%c0_33, %c0_34, %c32_35] : memref<1x8x128xf32, #tpu.memory_space<vmem>>, vector<1x8x32xf32>
    %86 = vector.shape_cast %85 : vector<1x8x32xf32> to vector<8x32xf32>
    %cst_36 = arith.constant dense<0.000000e+00> : vector<8x8xf32>
    %87 = tpu.matmul %84, %86, %cst_36 {dimension_numbers = #tpu.dot_dimension_numbers<[1], [1], [0], [0], [0, 0, 1, 0], [], []>} : vector<8x32xf32>, vector<8x32xf32>, vector<8x8xf32> -> vector<8x8xf32>
    %cst_37 = arith.constant dense<0xFF800000> : vector<8xf32>
    %88 = vector.multi_reduction <maximumf>, %87, %cst_37 [1] : vector<8x8xf32> to vector<8xf32>
    %89 = vector.shape_cast %88 : vector<8xf32> to vector<8x1xf32>
    %false_38 = arith.constant false
    %90 = vector.broadcast %false_38 : i1 to vector<8x1xi1>
    %91 = arith.select %90, %89, %89 : vector<8x1xi1>, vector<8x1xf32>
    %92 = vector.broadcast %89 : vector<8x1xf32> to vector<8x8xf32>
    %93 = arith.cmpf oge, %87, %92 : vector<8x8xf32>
    %94 = arith.extui %93 : vector<8x8xi1> to vector<8x8xi32>
    %95 = arith.sitofp %94 : vector<8x8xi32> to vector<8x8xf32>
    %96 = arith.truncf %95 : vector<8x8xf32> to vector<8x8xbf16>
    %cst_39 = arith.constant dense<0.000000e+00> : vector<8x128xf32>
    %97 = tpu.matmul %96, %0, %cst_39 {dimension_numbers = #tpu.dot_dimension_numbers<[1], [0], [0], [1], [0, 0, 1, 1], [], []>} : vector<8x8xbf16>, vector<8x128xbf16>, vector<8x128xf32> -> vector<8x128xf32>
    %98 = vector.extract_strided_slice %97 {offsets = [0, 0], sizes = [8, 1], strides = [1, 1]} : vector<8x128xf32> to vector<8x1xf32>
    %cst_40 = arith.constant 4.000000e+00 : f32
    %99 = vector.broadcast %cst_40 : f32 to vector<8x1xf32>
    %100 = arith.cmpf oge, %98, %99 : vector<8x1xf32>
    %101 = arith.ori %90, %100 : vector<8x1xi1>
    %102 = vector.broadcast %89 : vector<8x1xf32> to vector<8x8xf32>
    %103 = arith.cmpf oge, %87, %102 : vector<8x8xf32>
    %cst_41 = arith.constant 0xFF800000 : f32
    %104 = vector.broadcast %cst_41 : f32 to vector<8x8xf32>
    %105 = arith.select %103, %104, %87 : vector<8x8xi1>, vector<8x8xf32>
    %cst_42 = arith.constant dense<0xFF800000> : vector<8xf32>
    %106 = vector.multi_reduction <maximumf>, %105, %cst_42 [1] : vector<8x8xf32> to vector<8xf32>
    %107 = vector.shape_cast %106 : vector<8xf32> to vector<8x1xf32>
    %108 = arith.select %101, %91, %107 : vector<8x1xi1>, vector<8x1xf32>
    %109 = vector.broadcast %107 : vector<8x1xf32> to vector<8x8xf32>
    %110 = arith.cmpf oge, %87, %109 : vector<8x8xf32>
    %111 = arith.extui %110 : vector<8x8xi1> to vector<8x8xi32>
    %112 = arith.sitofp %111 : vector<8x8xi32> to vector<8x8xf32>
    %113 = arith.truncf %112 : vector<8x8xf32> to vector<8x8xbf16>
    %cst_43 = arith.constant dense<0.000000e+00> : vector<8x128xf32>
    %114 = tpu.matmul %113, %0, %cst_43 {dimension_numbers = #tpu.dot_dimension_numbers<[1], [0], [0], [1], [0, 0, 1, 1], [], []>} : vector<8x8xbf16>, vector<8x128xbf16>, vector<8x128xf32> -> vector<8x128xf32>
    %115 = vector.extract_strided_slice %114 {offsets = [0, 0], sizes = [8, 1], strides = [1, 1]} : vector<8x128xf32> to vector<8x1xf32>
    %cst_44 = arith.constant 4.000000e+00 : f32
    %116 = vector.broadcast %cst_44 : f32 to vector<8x1xf32>
    %117 = arith.cmpf oge, %115, %116 : vector<8x1xf32>
    %118 = arith.ori %101, %117 : vector<8x1xi1>
    %119 = vector.broadcast %107 : vector<8x1xf32> to vector<8x8xf32>
    %120 = arith.cmpf oge, %105, %119 : vector<8x8xf32>
    %cst_45 = arith.constant 0xFF800000 : f32
    %121 = vector.broadcast %cst_45 : f32 to vector<8x8xf32>
    %122 = arith.select %120, %121, %105 : vector<8x8xi1>, vector<8x8xf32>
    %cst_46 = arith.constant dense<0xFF800000> : vector<8xf32>
    %123 = vector.multi_reduction <maximumf>, %122, %cst_46 [1] : vector<8x8xf32> to vector<8xf32>
    %124 = vector.shape_cast %123 : vector<8xf32> to vector<8x1xf32>
    %125 = arith.select %118, %108, %124 : vector<8x1xi1>, vector<8x1xf32>
    %126 = vector.broadcast %124 : vector<8x1xf32> to vector<8x8xf32>
    %127 = arith.cmpf oge, %87, %126 : vector<8x8xf32>
    %128 = arith.extui %127 : vector<8x8xi1> to vector<8x8xi32>
    %129 = arith.sitofp %128 : vector<8x8xi32> to vector<8x8xf32>
    %130 = arith.truncf %129 : vector<8x8xf32> to vector<8x8xbf16>
    %cst_47 = arith.constant dense<0.000000e+00> : vector<8x128xf32>
    %131 = tpu.matmul %130, %0, %cst_47 {dimension_numbers = #tpu.dot_dimension_numbers<[1], [0], [0], [1], [0, 0, 1, 1], [], []>} : vector<8x8xbf16>, vector<8x128xbf16>, vector<8x128xf32> -> vector<8x128xf32>
    %132 = vector.extract_strided_slice %131 {offsets = [0, 0], sizes = [8, 1], strides = [1, 1]} : vector<8x128xf32> to vector<8x1xf32>
    %cst_48 = arith.constant 4.000000e+00 : f32
    %133 = vector.broadcast %cst_48 : f32 to vector<8x1xf32>
    %134 = arith.cmpf oge, %132, %133 : vector<8x1xf32>
    %135 = arith.ori %118, %134 : vector<8x1xi1>
    %136 = vector.broadcast %124 : vector<8x1xf32> to vector<8x8xf32>
    %137 = arith.cmpf oge, %122, %136 : vector<8x8xf32>
    %cst_49 = arith.constant 0xFF800000 : f32
    %138 = vector.broadcast %cst_49 : f32 to vector<8x8xf32>
    %139 = arith.select %137, %138, %122 : vector<8x8xi1>, vector<8x8xf32>
    %cst_50 = arith.constant dense<0xFF800000> : vector<8xf32>
    %140 = vector.multi_reduction <maximumf>, %139, %cst_50 [1] : vector<8x8xf32> to vector<8xf32>
    %141 = vector.shape_cast %140 : vector<8xf32> to vector<8x1xf32>
    %142 = arith.select %135, %125, %141 : vector<8x1xi1>, vector<8x1xf32>
    %143 = vector.broadcast %142 : vector<8x1xf32> to vector<8x8xf32>
    %144 = arith.cmpf oge, %87, %143 : vector<8x8xf32>
    %cst_51 = arith.constant 0xFF800000 : f32
    %145 = vector.broadcast %cst_51 : f32 to vector<8x8xf32>
    %146 = arith.select %144, %87, %145 : vector<8x8xi1>, vector<8x8xf32>
    %147 = vector.broadcast %89 : vector<8x1xf32> to vector<8x8xf32>
    %148 = arith.subf %146, %147 : vector<8x8xf32>
    %149 = math.exp %148 : vector<8x8xf32>
    %cst_52 = arith.constant dense<0.000000e+00> : vector<8xf32>
    %150 = vector.multi_reduction <add>, %149, %cst_52 [1] : vector<8x8xf32> to vector<8xf32>
    %151 = vector.shape_cast %150 : vector<8xf32> to vector<8x1xf32>
    %152 = tpu.reciprocal %151 : vector<8x1xf32> -> vector<8x1xf32>
    %153 = vector.broadcast %152 : vector<8x1xf32> to vector<8x8xf32>
    %154 = arith.mulf %149, %153 : vector<8x8xf32>
    %c0_53 = arith.constant 0 : index
    %c0_54 = arith.constant 0 : index
    %c32_55 = arith.constant 32 : index
    %155 = vector.load %arg5[%c0_53, %c0_54, %c32_55] : memref<1x8x128xf32, #tpu.memory_space<vmem>>, vector<1x8x32xf32>
    %156 = vector.shape_cast %155 : vector<1x8x32xf32> to vector<8x32xf32>
    %cst_56 = arith.constant dense<0.000000e+00> : vector<8x32xf32>
    %157 = tpu.matmul %154, %156, %cst_56 {dimension_numbers = #tpu.dot_dimension_numbers<[1], [0], [0], [1], [0, 0, 1, 1], [], []>} : vector<8x8xf32>, vector<8x32xf32>, vector<8x32xf32> -> vector<8x32xf32>
    %c0_57 = arith.constant 0 : index
    %c1 = arith.constant 1 : index
    %c0_58 = arith.constant 0 : index
    %c0_59 = arith.constant 0 : index
    %158 = vector.load %arg7[%c0_57, %c1, %c0_58, %c0_59] : memref<1x4x8x8xf32, #tpu.memory_space<vmem>>, vector<1x1x8x8xf32>
    %159 = vector.shape_cast %158 : vector<1x1x8x8xf32> to vector<8x8xf32>
    %160 = vector.shape_cast %154 : vector<8x8xf32> to vector<1x1x8x8xf32>
    tpu.vector_store %arg7[%c0_57, %c1, %c0_58, %c0_59], %160 {strides = array<i32>} : memref<1x4x8x8xf32, #tpu.memory_space<vmem>>, vector<1x1x8x8xf32>,
    %c0_60 = arith.constant 0 : index
    %c0_61 = arith.constant 0 : index
    %c64 = arith.constant 64 : index
    %161 = vector.load %arg3[%c0_60, %c0_61, %c64] : memref<1x8x128xf32, #tpu.memory_space<vmem>>, vector<1x8x32xf32>
    %162 = vector.shape_cast %161 : vector<1x8x32xf32> to vector<8x32xf32>
    %cst_62 = arith.constant 0.176776692 : f32
    %163 = vector.broadcast %cst_62 : f32 to vector<8x32xf32>
    %164 = arith.mulf %162, %163 : vector<8x32xf32>
    %c0_63 = arith.constant 0 : index
    %c0_64 = arith.constant 0 : index
    %c64_65 = arith.constant 64 : index
    %165 = vector.load %arg4[%c0_63, %c0_64, %c64_65] : memref<1x8x128xf32, #tpu.memory_space<vmem>>, vector<1x8x32xf32>
    %166 = vector.shape_cast %165 : vector<1x8x32xf32> to vector<8x32xf32>
    %cst_66 = arith.constant dense<0.000000e+00> : vector<8x8xf32>
    %167 = tpu.matmul %164, %166, %cst_66 {dimension_numbers = #tpu.dot_dimension_numbers<[1], [1], [0], [0], [0, 0, 1, 0], [], []>} : vector<8x32xf32>, vector<8x32xf32>, vector<8x8xf32> -> vector<8x8xf32>
    %cst_67 = arith.constant dense<0xFF800000> : vector<8xf32>
    %168 = vector.multi_reduction <maximumf>, %167, %cst_67 [1] : vector<8x8xf32> to vector<8xf32>
    %169 = vector.shape_cast %168 : vector<8xf32> to vector<8x1xf32>
    %false_68 = arith.constant false
    %170 = vector.broadcast %false_68 : i1 to vector<8x1xi1>
    %171 = arith.select %170, %169, %169 : vector<8x1xi1>, vector<8x1xf32>
    %172 = vector.broadcast %169 : vector<8x1xf32> to vector<8x8xf32>
    %173 = arith.cmpf oge, %167, %172 : vector<8x8xf32>
    %174 = arith.extui %173 : vector<8x8xi1> to vector<8x8xi32>
    %175 = arith.sitofp %174 : vector<8x8xi32> to vector<8x8xf32>
    %176 = arith.truncf %175 : vector<8x8xf32> to vector<8x8xbf16>
    %cst_69 = arith.constant dense<0.000000e+00> : vector<8x128xf32>
    %177 = tpu.matmul %176, %0, %cst_69 {dimension_numbers = #tpu.dot_dimension_numbers<[1], [0], [0], [1], [0, 0, 1, 1], [], []>} : vector<8x8xbf16>, vector<8x128xbf16>, vector<8x128xf32> -> vector<8x128xf32>
    %178 = vector.extract_strided_slice %177 {offsets = [0, 0], sizes = [8, 1], strides = [1, 1]} : vector<8x128xf32> to vector<8x1xf32>
    %cst_70 = arith.constant 4.000000e+00 : f32
    %179 = vector.broadcast %cst_70 : f32 to vector<8x1xf32>
    %180 = arith.cmpf oge, %178, %179 : vector<8x1xf32>
    %181 = arith.ori %170, %180 : vector<8x1xi1>
    %182 = vector.broadcast %169 : vector<8x1xf32> to vector<8x8xf32>
    %183 = arith.cmpf oge, %167, %182 : vector<8x8xf32>
    %cst_71 = arith.constant 0xFF800000 : f32
    %184 = vector.broadcast %cst_71 : f32 to vector<8x8xf32>
    %185 = arith.select %183, %184, %167 : vector<8x8xi1>, vector<8x8xf32>
    %cst_72 = arith.constant dense<0xFF800000> : vector<8xf32>
    %186 = vector.multi_reduction <maximumf>, %185, %cst_72 [1] : vector<8x8xf32> to vector<8xf32>
    %187 = vector.shape_cast %186 : vector<8xf32> to vector<8x1xf32>
    %188 = arith.select %181, %171, %187 : vector<8x1xi1>, vector<8x1xf32>
    %189 = vector.broadcast %187 : vector<8x1xf32> to vector<8x8xf32>
    %190 = arith.cmpf oge, %167, %189 : vector<8x8xf32>
    %191 = arith.extui %190 : vector<8x8xi1> to vector<8x8xi32>
    %192 = arith.sitofp %191 : vector<8x8xi32> to vector<8x8xf32>
    %193 = arith.truncf %192 : vector<8x8xf32> to vector<8x8xbf16>
    %cst_73 = arith.constant dense<0.000000e+00> : vector<8x128xf32>
    %194 = tpu.matmul %193, %0, %cst_73 {dimension_numbers = #tpu.dot_dimension_numbers<[1], [0], [0], [1], [0, 0, 1, 1], [], []>} : vector<8x8xbf16>, vector<8x128xbf16>, vector<8x128xf32> -> vector<8x128xf32>
    %195 = vector.extract_strided_slice %194 {offsets = [0, 0], sizes = [8, 1], strides = [1, 1]} : vector<8x128xf32> to vector<8x1xf32>
    %cst_74 = arith.constant 4.000000e+00 : f32
    %196 = vector.broadcast %cst_74 : f32 to vector<8x1xf32>
    %197 = arith.cmpf oge, %195, %196 : vector<8x1xf32>
    %198 = arith.ori %181, %197 : vector<8x1xi1>
    %199 = vector.broadcast %187 : vector<8x1xf32> to vector<8x8xf32>
    %200 = arith.cmpf oge, %185, %199 : vector<8x8xf32>
    %cst_75 = arith.constant 0xFF800000 : f32
    %201 = vector.broadcast %cst_75 : f32 to vector<8x8xf32>
    %202 = arith.select %200, %201, %185 : vector<8x8xi1>, vector<8x8xf32>
    %cst_76 = arith.constant dense<0xFF800000> : vector<8xf32>
    %203 = vector.multi_reduction <maximumf>, %202, %cst_76 [1] : vector<8x8xf32> to vector<8xf32>
    %204 = vector.shape_cast %203 : vector<8xf32> to vector<8x1xf32>
    %205 = arith.select %198, %188, %204 : vector<8x1xi1>, vector<8x1xf32>
    %206 = vector.broadcast %204 : vector<8x1xf32> to vector<8x8xf32>
    %207 = arith.cmpf oge, %167, %206 : vector<8x8xf32>
    %208 = arith.extui %207 : vector<8x8xi1> to vector<8x8xi32>
    %209 = arith.sitofp %208 : vector<8x8xi32> to vector<8x8xf32>
    %210 = arith.truncf %209 : vector<8x8xf32> to vector<8x8xbf16>
    %cst_77 = arith.constant dense<0.000000e+00> : vector<8x128xf32>
    %211 = tpu.matmul %210, %0, %cst_77 {dimension_numbers = #tpu.dot_dimension_numbers<[1], [0], [0], [1], [0, 0, 1, 1], [], []>} : vector<8x8xbf16>, vector<8x128xbf16>, vector<8x128xf32> -> vector<8x128xf32>
    %212 = vector.extract_strided_slice %211 {offsets = [0, 0], sizes = [8, 1], strides = [1, 1]} : vector<8x128xf32> to vector<8x1xf32>
    %cst_78 = arith.constant 4.000000e+00 : f32
    %213 = vector.broadcast %cst_78 : f32 to vector<8x1xf32>
    %214 = arith.cmpf oge, %212, %213 : vector<8x1xf32>
    %215 = arith.ori %198, %214 : vector<8x1xi1>
    %216 = vector.broadcast %204 : vector<8x1xf32> to vector<8x8xf32>
    %217 = arith.cmpf oge, %202, %216 : vector<8x8xf32>
    %cst_79 = arith.constant 0xFF800000 : f32
    %218 = vector.broadcast %cst_79 : f32 to vector<8x8xf32>
    %219 = arith.select %217, %218, %202 : vector<8x8xi1>, vector<8x8xf32>
    %cst_80 = arith.constant dense<0xFF800000> : vector<8xf32>
    %220 = vector.multi_reduction <maximumf>, %219, %cst_80 [1] : vector<8x8xf32> to vector<8xf32>
    %221 = vector.shape_cast %220 : vector<8xf32> to vector<8x1xf32>
    %222 = arith.select %215, %205, %221 : vector<8x1xi1>, vector<8x1xf32>
    %223 = vector.broadcast %222 : vector<8x1xf32> to vector<8x8xf32>
    %224 = arith.cmpf oge, %167, %223 : vector<8x8xf32>
    %cst_81 = arith.constant 0xFF800000 : f32
    %225 = vector.broadcast %cst_81 : f32 to vector<8x8xf32>
    %226 = arith.select %224, %167, %225 : vector<8x8xi1>, vector<8x8xf32>
    %227 = vector.broadcast %169 : vector<8x1xf32> to vector<8x8xf32>
    %228 = arith.subf %226, %227 : vector<8x8xf32>
    %229 = math.exp %228 : vector<8x8xf32>
    %cst_82 = arith.constant dense<0.000000e+00> : vector<8xf32>
    %230 = vector.multi_reduction <add>, %229, %cst_82 [1] : vector<8x8xf32> to vector<8xf32>
    %231 = vector.shape_cast %230 : vector<8xf32> to vector<8x1xf32>
    %232 = tpu.reciprocal %231 : vector<8x1xf32> -> vector<8x1xf32>
    %233 = vector.broadcast %232 : vector<8x1xf32> to vector<8x8xf32>
    %234 = arith.mulf %229, %233 : vector<8x8xf32>
    %c0_83 = arith.constant 0 : index
    %c0_84 = arith.constant 0 : index
    %c64_85 = arith.constant 64 : index
    %235 = vector.load %arg5[%c0_83, %c0_84, %c64_85] : memref<1x8x128xf32, #tpu.memory_space<vmem>>, vector<1x8x32xf32>
    %236 = vector.shape_cast %235 : vector<1x8x32xf32> to vector<8x32xf32>
    %cst_86 = arith.constant dense<0.000000e+00> : vector<8x32xf32>
    %237 = tpu.matmul %234, %236, %cst_86 {dimension_numbers = #tpu.dot_dimension_numbers<[1], [0], [0], [1], [0, 0, 1, 1], [], []>} : vector<8x8xf32>, vector<8x32xf32>, vector<8x32xf32> -> vector<8x32xf32>
    %c0_87 = arith.constant 0 : index
    %c2 = arith.constant 2 : index
    %c0_88 = arith.constant 0 : index
    %c0_89 = arith.constant 0 : index
    %238 = vector.load %arg7[%c0_87, %c2, %c0_88, %c0_89] : memref<1x4x8x8xf32, #tpu.memory_space<vmem>>, vector<1x1x8x8xf32>
    %239 = vector.shape_cast %238 : vector<1x1x8x8xf32> to vector<8x8xf32>
    %240 = vector.shape_cast %234 : vector<8x8xf32> to vector<1x1x8x8xf32>
    tpu.vector_store %arg7[%c0_87, %c2, %c0_88, %c0_89], %240 {strides = array<i32>} : memref<1x4x8x8xf32, #tpu.memory_space<vmem>>, vector<1x1x8x8xf32>,
    %c0_90 = arith.constant 0 : index
    %c0_91 = arith.constant 0 : index
    %c96 = arith.constant 96 : index
    %241 = vector.load %arg3[%c0_90, %c0_91, %c96] : memref<1x8x128xf32, #tpu.memory_space<vmem>>, vector<1x8x32xf32>
    %242 = vector.shape_cast %241 : vector<1x8x32xf32> to vector<8x32xf32>
    %cst_92 = arith.constant 0.176776692 : f32
    %243 = vector.broadcast %cst_92 : f32 to vector<8x32xf32>
    %244 = arith.mulf %242, %243 : vector<8x32xf32>
    %c0_93 = arith.constant 0 : index
    %c0_94 = arith.constant 0 : index
    %c96_95 = arith.constant 96 : index
    %245 = vector.load %arg4[%c0_93, %c0_94, %c96_95] : memref<1x8x128xf32, #tpu.memory_space<vmem>>, vector<1x8x32xf32>
    %246 = vector.shape_cast %245 : vector<1x8x32xf32> to vector<8x32xf32>
    %cst_96 = arith.constant dense<0.000000e+00> : vector<8x8xf32>
    %247 = tpu.matmul %244, %246, %cst_96 {dimension_numbers = #tpu.dot_dimension_numbers<[1], [1], [0], [0], [0, 0, 1, 0], [], []>} : vector<8x32xf32>, vector<8x32xf32>, vector<8x8xf32> -> vector<8x8xf32>
    %cst_97 = arith.constant dense<0xFF800000> : vector<8xf32>
    %248 = vector.multi_reduction <maximumf>, %247, %cst_97 [1] : vector<8x8xf32> to vector<8xf32>
    %249 = vector.shape_cast %248 : vector<8xf32> to vector<8x1xf32>
    %false_98 = arith.constant false
    %250 = vector.broadcast %false_98 : i1 to vector<8x1xi1>
    %251 = arith.select %250, %249, %249 : vector<8x1xi1>, vector<8x1xf32>
    %252 = vector.broadcast %249 : vector<8x1xf32> to vector<8x8xf32>
    %253 = arith.cmpf oge, %247, %252 : vector<8x8xf32>
    %254 = arith.extui %253 : vector<8x8xi1> to vector<8x8xi32>
    %255 = arith.sitofp %254 : vector<8x8xi32> to vector<8x8xf32>
    %256 = arith.truncf %255 : vector<8x8xf32> to vector<8x8xbf16>
    %cst_99 = arith.constant dense<0.000000e+00> : vector<8x128xf32>
    %257 = tpu.matmul %256, %0, %cst_99 {dimension_numbers = #tpu.dot_dimension_numbers<[1], [0], [0], [1], [0, 0, 1, 1], [], []>} : vector<8x8xbf16>, vector<8x128xbf16>, vector<8x128xf32> -> vector<8x128xf32>
    %258 = vector.extract_strided_slice %257 {offsets = [0, 0], sizes = [8, 1], strides = [1, 1]} : vector<8x128xf32> to vector<8x1xf32>
    %cst_100 = arith.constant 4.000000e+00 : f32
    %259 = vector.broadcast %cst_100 : f32 to vector<8x1xf32>
    %260 = arith.cmpf oge, %258, %259 : vector<8x1xf32>
    %261 = arith.ori %250, %260 : vector<8x1xi1>
    %262 = vector.broadcast %249 : vector<8x1xf32> to vector<8x8xf32>
    %263 = arith.cmpf oge, %247, %262 : vector<8x8xf32>
    %cst_101 = arith.constant 0xFF800000 : f32
    %264 = vector.broadcast %cst_101 : f32 to vector<8x8xf32>
    %265 = arith.select %263, %264, %247 : vector<8x8xi1>, vector<8x8xf32>
    %cst_102 = arith.constant dense<0xFF800000> : vector<8xf32>
    %266 = vector.multi_reduction <maximumf>, %265, %cst_102 [1] : vector<8x8xf32> to vector<8xf32>
    %267 = vector.shape_cast %266 : vector<8xf32> to vector<8x1xf32>
    %268 = arith.select %261, %251, %267 : vector<8x1xi1>, vector<8x1xf32>
    %269 = vector.broadcast %267 : vector<8x1xf32> to vector<8x8xf32>
    %270 = arith.cmpf oge, %247, %269 : vector<8x8xf32>
    %271 = arith.extui %270 : vector<8x8xi1> to vector<8x8xi32>
    %272 = arith.sitofp %271 : vector<8x8xi32> to vector<8x8xf32>
    %273 = arith.truncf %272 : vector<8x8xf32> to vector<8x8xbf16>
    %cst_103 = arith.constant dense<0.000000e+00> : vector<8x128xf32>
    %274 = tpu.matmul %273, %0, %cst_103 {dimension_numbers = #tpu.dot_dimension_numbers<[1], [0], [0], [1], [0, 0, 1, 1], [], []>} : vector<8x8xbf16>, vector<8x128xbf16>, vector<8x128xf32> -> vector<8x128xf32>
    %275 = vector.extract_strided_slice %274 {offsets = [0, 0], sizes = [8, 1], strides = [1, 1]} : vector<8x128xf32> to vector<8x1xf32>
    %cst_104 = arith.constant 4.000000e+00 : f32
    %276 = vector.broadcast %cst_104 : f32 to vector<8x1xf32>
    %277 = arith.cmpf oge, %275, %276 : vector<8x1xf32>
    %278 = arith.ori %261, %277 : vector<8x1xi1>
    %279 = vector.broadcast %267 : vector<8x1xf32> to vector<8x8xf32>
    %280 = arith.cmpf oge, %265, %279 : vector<8x8xf32>
    %cst_105 = arith.constant 0xFF800000 : f32
    %281 = vector.broadcast %cst_105 : f32 to vector<8x8xf32>
    %282 = arith.select %280, %281, %265 : vector<8x8xi1>, vector<8x8xf32>
    %cst_106 = arith.constant dense<0xFF800000> : vector<8xf32>
    %283 = vector.multi_reduction <maximumf>, %282, %cst_106 [1] : vector<8x8xf32> to vector<8xf32>
    %284 = vector.shape_cast %283 : vector<8xf32> to vector<8x1xf32>
    %285 = arith.select %278, %268, %284 : vector<8x1xi1>, vector<8x1xf32>
    %286 = vector.broadcast %284 : vector<8x1xf32> to vector<8x8xf32>
    %287 = arith.cmpf oge, %247, %286 : vector<8x8xf32>
    %288 = arith.extui %287 : vector<8x8xi1> to vector<8x8xi32>
    %289 = arith.sitofp %288 : vector<8x8xi32> to vector<8x8xf32>
    %290 = arith.truncf %289 : vector<8x8xf32> to vector<8x8xbf16>
    %cst_107 = arith.constant dense<0.000000e+00> : vector<8x128xf32>
    %291 = tpu.matmul %290, %0, %cst_107 {dimension_numbers = #tpu.dot_dimension_numbers<[1], [0], [0], [1], [0, 0, 1, 1], [], []>} : vector<8x8xbf16>, vector<8x128xbf16>, vector<8x128xf32> -> vector<8x128xf32>
    %292 = vector.extract_strided_slice %291 {offsets = [0, 0], sizes = [8, 1], strides = [1, 1]} : vector<8x128xf32> to vector<8x1xf32>
    %cst_108 = arith.constant 4.000000e+00 : f32
    %293 = vector.broadcast %cst_108 : f32 to vector<8x1xf32>
    %294 = arith.cmpf oge, %292, %293 : vector<8x1xf32>
    %295 = arith.ori %278, %294 : vector<8x1xi1>
    %296 = vector.broadcast %284 : vector<8x1xf32> to vector<8x8xf32>
    %297 = arith.cmpf oge, %282, %296 : vector<8x8xf32>
    %cst_109 = arith.constant 0xFF800000 : f32
    %298 = vector.broadcast %cst_109 : f32 to vector<8x8xf32>
    %299 = arith.select %297, %298, %282 : vector<8x8xi1>, vector<8x8xf32>
    %cst_110 = arith.constant dense<0xFF800000> : vector<8xf32>
    %300 = vector.multi_reduction <maximumf>, %299, %cst_110 [1] : vector<8x8xf32> to vector<8xf32>
    %301 = vector.shape_cast %300 : vector<8xf32> to vector<8x1xf32>
    %302 = arith.select %295, %285, %301 : vector<8x1xi1>, vector<8x1xf32>
    %303 = vector.broadcast %302 : vector<8x1xf32> to vector<8x8xf32>
    %304 = arith.cmpf oge, %247, %303 : vector<8x8xf32>
    %cst_111 = arith.constant 0xFF800000 : f32
    %305 = vector.broadcast %cst_111 : f32 to vector<8x8xf32>
    %306 = arith.select %304, %247, %305 : vector<8x8xi1>, vector<8x8xf32>
    %307 = vector.broadcast %249 : vector<8x1xf32> to vector<8x8xf32>
    %308 = arith.subf %306, %307 : vector<8x8xf32>
    %309 = math.exp %308 : vector<8x8xf32>
    %cst_112 = arith.constant dense<0.000000e+00> : vector<8xf32>
    %310 = vector.multi_reduction <add>, %309, %cst_112 [1] : vector<8x8xf32> to vector<8xf32>
    %311 = vector.shape_cast %310 : vector<8xf32> to vector<8x1xf32>
    %312 = tpu.reciprocal %311 : vector<8x1xf32> -> vector<8x1xf32>
    %313 = vector.broadcast %312 : vector<8x1xf32> to vector<8x8xf32>
    %314 = arith.mulf %309, %313 : vector<8x8xf32>
    %c0_113 = arith.constant 0 : index
    %c0_114 = arith.constant 0 : index
    %c96_115 = arith.constant 96 : index
    %315 = vector.load %arg5[%c0_113, %c0_114, %c96_115] : memref<1x8x128xf32, #tpu.memory_space<vmem>>, vector<1x8x32xf32>
    %316 = vector.shape_cast %315 : vector<1x8x32xf32> to vector<8x32xf32>
    %cst_116 = arith.constant dense<0.000000e+00> : vector<8x32xf32>
    %317 = tpu.matmul %314, %316, %cst_116 {dimension_numbers = #tpu.dot_dimension_numbers<[1], [0], [0], [1], [0, 0, 1, 1], [], []>} : vector<8x8xf32>, vector<8x32xf32>, vector<8x32xf32> -> vector<8x32xf32>
    %c0_117 = arith.constant 0 : index
    %c3 = arith.constant 3 : index
    %c0_118 = arith.constant 0 : index
    %c0_119 = arith.constant 0 : index
    %318 = vector.load %arg7[%c0_117, %c3, %c0_118, %c0_119] : memref<1x4x8x8xf32, #tpu.memory_space<vmem>>, vector<1x1x8x8xf32>
    %319 = vector.shape_cast %318 : vector<1x1x8x8xf32> to vector<8x8xf32>
    %320 = vector.shape_cast %314 : vector<8x8xf32> to vector<1x1x8x8xf32>
    tpu.vector_store %arg7[%c0_117, %c3, %c0_118, %c0_119], %320 {strides = array<i32>} : memref<1x4x8x8xf32, #tpu.memory_space<vmem>>, vector<1x1x8x8xf32>,
    %321 = tpu.concatenate %77, %157, %237, %317 in 1 : vector<8x32xf32>, vector<8x32xf32>, vector<8x32xf32>, vector<8x32xf32> -> vector<8x128xf32>
    %c0_120 = arith.constant 0 : index
    %c0_121 = arith.constant 0 : index
    %c0_122 = arith.constant 0 : index
    %322 = vector.load %arg6[%c0_120, %c0_121, %c0_122] : memref<1x8x128xf32, #tpu.memory_space<vmem>>, vector<1x8x128xf32>
    %323 = vector.shape_cast %322 : vector<1x8x128xf32> to vector<8x128xf32>
    %324 = vector.shape_cast %321 : vector<8x128xf32> to vector<1x8x128xf32>
    tpu.vector_store %arg6[%c0_120, %c0_121, %c0_122], %324 {strides = array<i32>} : memref<1x8x128xf32, #tpu.memory_space<vmem>>, vector<1x8x128xf32>,
    return
  }
  func.func @transform_0(%arg0: i32, %arg1: i32, %arg2: i32) -> (i32, i32, i32) {
    %c0_i32 = arith.constant 0 : i32
    return %arg0, %arg2, %arg1 : i32, i32, i32
  }
  func.func @transform_1(%arg0: i32, %arg1: i32, %arg2: i32) -> (i32, i32, i32) {
    %c0_i32 = arith.constant 0 : i32
    %c0_i32_0 = arith.constant 0 : i32
    return %arg0, %c0_i32, %arg1 : i32, i32, i32
  }
  func.func @transform_2(%arg0: i32, %arg1: i32, %arg2: i32) -> (i32, i32, i32) {
    %c0_i32 = arith.constant 0 : i32
    %c0_i32_0 = arith.constant 0 : i32
    return %arg0, %c0_i32, %arg1 : i32, i32, i32
  }
  func.func @transform_3(%arg0: i32, %arg1: i32, %arg2: i32) -> (i32, i32, i32) {
    %c0_i32 = arith.constant 0 : i32
    return %arg0, %arg2, %arg1 : i32, i32, i32
  }
  func.func @transform_4(%arg0: i32, %arg1: i32, %arg2: i32) -> (i32, i32, i32, i32) {
    %c0_i32 = arith.constant 0 : i32
    %c0_i32_0 = arith.constant 0 : i32
    return %arg0, %arg1, %arg2, %c0_i32 : i32, i32, i32, i32
  }
}

</mosaic_0001>

<bundles_post_ra>
// kernel: tpu_custom_call.1
= control target key start
LH: loop header
LB: loop body
LE: loop exit
PB: predicated region body
PF: predicated region fallthrough
CT: control target
= control target key end

     0   :  { %s3005_s0 = inlined_call_operand.hbm [shape: f32[2,8,128], index: 0, kind: input, shape index: {}]   ;;  %s3006_s1 = inlined_call_operand.hbm [shape: f32[2,8,128], index: 1, kind: input, shape index: {}]   ;;  %s3007_s2 = inlined_call_operand.hbm [shape: f32[2,8,128], index: 2, kind: input, shape index: {}]   ;;  %s3008_s3 = inlined_call_operand.hbm [shape: f32[2,8,128], index: 3, kind: output, shape index: {0}]   ;;  %s3009_s4 = inlined_call_operand.hbm [shape: f32[2,4,8,8], index: 4, kind: output, shape index: {1}]  }
   0x1   :  { %3018 = sst [smem:[#allocation19_spill]] %s3006_s1 }
   0x2   :  { %10 = vsyncpa [#allocation3], 0 }
   0x3   :  { %12 = vsyncpa [#allocation3 + $0x1], 0 }
   0x4   :  { %13 = vsyncpa [#allocation6], 0 }
   0x5   :  { %15 = vsyncpa [#allocation6 + $0x1], 0 }
   0x6   :  { %16 = vsyncpa [#allocation4], 0 }
   0x7   :  { %18 = vsyncpa [#allocation4 + $0x1], 0 }
   0x8   :  { %19 = vsyncpa [#allocation10], 0 }
   0x9   :  { %21 = vsyncpa [#allocation10 + $0x1], 0  ;;  %s2500_s15 = smov 0   ;;  %s2502_s16 = smov 0  }
   0xa   :  { %s2504_s17 = smov 0   ;;  %s2506_s18 = smov 0  }
   0xb   :  { %s2508_s19 = smov 0   ;;  %s2510_s20 = smov 0  }
   0xc LB: > { %3019 = sst [smem:[#allocation15_spill]] %s2456_s19  ;;  %s2531_s21 = sadd.s32 4294967295, %s2460_s20   ;;  %s2460_s20 = sphi %s2510_s20, %s27_s20   ;;  %s2456_s19 = sphi %s2508_s19, %s3043_s19   ;;  %s2452_s18 = sphi %s2506_s18, %s3042_s18   ;;  %s2448_s17 = sphi %s2504_s17, %s3046_s17   ;;  %s2444_s16 = sphi %s2502_s16, %s3045_s16   ;;  %s2440_s15 = sphi %s2500_s15, %s3044_s15  }
   0xd   : > { %3020 = sst [smem:[#allocation16_spill]] %s2460_s20  ;;  %s1935_s22 = sadd.s32 4294967294, %s2460_s20  }
   0xe   : > { %s46_s23 = sadd.s32 1, %s2456_s19  ;;  %s57_s24 = sadd.s32 1, %s2448_s17 }
   0xf   : > { %p48_p0 = scmp.ge.s32.totalorder %s46_s23, 2  ;;  %p64_p1 = scmp.ne.s32.totalorder %s2448_s17, %s2444_s16 }
  0x10   : > { %p65_p2 = scmp.eq.s32.totalorder %s2460_s20, 0  ;;  %p70_p3 = scmp.ne.s32.totalorder %s2444_s16, %s2440_s15 }
  0x11   : > { %s3048_s23 = smov (%p48_p0, %s46_s23), 0  ;;  %p71_p5 = scmp.eq.s32.totalorder %s2531_s21, 0 }
  0x12   : > { %3021 = sst [smem:[#allocation17_spill]] %s3048_s23  ;;  %p2543_p4 = por %p65_p2, %p64_p1 }
  0x13   : > { %s50_s26 = ssub.s32 %s2456_s19, %s3048_s23  ;;  %p154_p6 = scmp.eq.s32.totalorder %s2531_s21, 1 }
  0x14   : > { %p55_p7 = scmp.eq.s32.totalorder %s50_s26, 0  ;;  %p2551_p8 = por %p71_p5, %p70_p3 }
  0x15   : > { %p2555_p9 = por %p154_p6, %p64_p1  ;;  %p160_p10 = scmp.eq.s32.totalorder %s1935_s22, 1 }
  0x16   : > { %s3023_s27 = scalar_select %p2551_p8, 1, 0 }
  0x17   : > { %s3024_s28 = scalar_select %p2555_p9, 1, 0 }
  0x18   : > { %s2560_s29 = scalar_select %p55_p7, %s2448_s17, %s57_s24  }
  0x19   : > { %p2562_p11 = por %p160_p10, %p70_p3  ;;  %p2176_p13 = scmp.lt.s32.totalorder %s2460_s20, 2 }
  0x1a   : > { %3025 = sst [smem:[#allocation18_spill]] %s2560_s29  ;;  %s3010_s5 = sand.u32 1, %s2448_s17  }
  0x1b   : > { %s3026_s30 = scalar_select %p2562_p11, 1, 0 }
  0x1c   : > { %s2571_s6 = sshll.u32 %s3010_s5, 3  ;;  %s2574_s7 = sshll.u32 %s2456_s19, 7 }
  0x1d   : > { %p2578_p0 = pnand %p2176_p13, %p2543_p4  ;;  %s230_s9 = sand.u32 1, %s2460_s20  }
  0x1e   : > { %s3028_s1 = sld [smem:[#allocation19_spill]]  ;;  %s234_s13 = scalar_lea.vmem [#allocation5], %s2571_s6 }
  0x1f   : > { %s3027_s8 = scalar_select %p2578_p0, 1, 0 }
  0x20   : > { %s242_s14 = sshll.u32 %s234_s13, 4  ;;  %s2594_s22 = scalar_lea.sflag [#allocation6], %s230_s9  ;;  %s2591_s14 = int_to_ptr.vmem [resolvable:$true] %s242_s14 }
  0x21   : > { %p2600_p4 = pneg %p2578_p0 }
  0x24   : > { %s2587_s12 = scalar_lea.hbm %s3028_s1, %s2574_s7  ;;  %s2257_s11 = scalar_lea.hbm %s3028_s1, 256 }
  0x25   : > { %s2252_s24 = scalar_lea.hbm %s2587_s12, 128  ;;  %p2258_p7 = scmp.lt.u32.totalorder %s2587_s12, %s3028_s1 }
  0x26   : > { %p2253_p3 = scmp.ne.s32.totalorder %s2587_s12, %s2252_s24  ;;  %p2259_p10 = scmp.lt.u32.totalorder %s2257_s11, %s2252_s24 }
  0x27   : > { %p2261_p12 = scmp.lt.u32.totalorder %s2252_s24, %s2587_s12 }
  0x28   : > { %p2255_p5 = pnand %p2600_p4, %p2253_p3  ;;  %p2260_p13 = por %p2259_p10, %p2258_p7 }
  0x2a   : > { %p2256_p6 = pneg %p2255_p5  ;;  %p2262_p1 = por %p2261_p12, %p2260_p13 }
  0x2c   : > { %p2263_p2 = pnand %p2262_p1, %p2256_p6 }
  0x2e   : > { %2266 = shalt.err (!%p2263_p2)
}
  0x2f   : > { %s2267_s9 = scalar_lea.vmem %s2591_s14, 128  ;;  %s2462_s26 = smov [#allocation5]  }
  0x30   : > { %p2268_p3 = scmp.ne.s32.totalorder %s2591_s14, %s2267_s9  ;;  %s2272_s10 = sshll.u32 %s2462_s26, 4  ;;  %s2273_s10 = int_to_ptr.vmem [resolvable:$false] %s2272_s10 }
  0x31   : > { %s2274_s5 = scalar_lea.vmem %s2273_s10, 256  ;;  %p2275_p9 = scmp.lt.s32.totalorder %s2591_s14, %s2273_s10 }
  0x32   : > { %p2270_p5 = pnand %p2268_p3, %p2600_p4  ;;  %p2276_p8 = scmp.lt.s32.totalorder %s2274_s5, %s2267_s9 }
  0x34   : > { %p2271_p11 = pneg %p2270_p5  ;;  %p2277_p7 = por %p2276_p8, %p2275_p9 }
  0x36   : > { %p2278_p10 = pnand %p2277_p7, %p2271_p11 }
  0x38   : > { %2281 = shalt.err (!%p2278_p10)
}
  0x39   : > { %2165 = dma.hbm_to_vmem [thread:$0]  (!%p2578_p0), %s2587_s12, 128, %s2591_s14, %s2594_s22  }
  0x3a   : > { %p3030_p12 = scmp.lt.s32.totalorder %s2460_s20, 3  ;;  %p3031_p1 = scmp.ge.s32.totalorder %s2460_s20, 1 }
  0x3b   : > { %s2636_s9 = scalar_lea.hbm %s3005_s0, %s2574_s7  ;;  %s214_s26 = scalar_lea.vmem [#allocation2], %s2571_s6 }
  0x3c   : > { %p2628_p2 = pnand %p3031_p1, %p3030_p12  ;;  %s223_s10 = sshll.u32 %s214_s26, 4  ;;  %s2639_s10 = int_to_ptr.vmem [resolvable:$true] %s223_s10 }
  0x3d   : > { %s2645_s5 = scalar_lea.hbm %s3007_s2, %s2574_s7  ;;  %s3033_s1 = sand.u32 1, %s2448_s17  }
  0x3e   : > { %s3032_s24 = scalar_select %p2628_p2, 1, 0 }
  0x3f   : > { %s211_s23 = scalar_lea.sflag [#allocation3], %s3033_s1  ;;  %s2282_s19 = scalar_lea.hbm %s2636_s9, 128 }
  0x40   : > { %p2283_p8 = scmp.ne.s32.totalorder %s2636_s9, %s2282_s19  ;;  %s2287_s29 = scalar_lea.hbm %s3005_s0, 256 }
  0x41   : > { %p2288_p6 = scmp.lt.u32.totalorder %s2636_s9, %s3005_s0  ;;  %p2289_p13 = scmp.lt.u32.totalorder %s2287_s29, %s2282_s19 }
  0x42   : > { %p2285_p9 = pnand %p2283_p8, %p2600_p4  ;;  %p2291_p5 = scmp.lt.u32.totalorder %s2282_s19, %s2636_s9 }
  0x43   : > { %p2290_p3 = por %p2289_p13, %p2288_p6 }
  0x44   : > { %p2286_p11 = pneg %p2285_p9 }
  0x45   : > { %p2292_p7 = por %p2291_p5, %p2290_p3 }
  0x47   : > { %p2293_p10 = pnand %p2292_p7, %p2286_p11 }
  0x49   : > { %2296 = shalt.err (!%p2293_p10)
}
  0x4a   : > { %s2297_s1 = scalar_lea.vmem %s2639_s10, 128  ;;  %s2463_s7 = smov [#allocation2]  }
  0x4b   : > { %p2298_p12 = scmp.ne.s32.totalorder %s2639_s10, %s2297_s1  ;;  %s2302_s12 = sshll.u32 %s2463_s7, 4  ;;  %s2303_s12 = int_to_ptr.vmem [resolvable:$false] %s2302_s12 }
  0x4c   : > { %s2304_s20 = scalar_lea.vmem %s2303_s12, 256  ;;  %p2305_p9 = scmp.lt.s32.totalorder %s2639_s10, %s2303_s12 }
  0x4d   : > { %p2300_p1 = pnand %p2298_p12, %p2600_p4  ;;  %p2306_p2 = scmp.lt.s32.totalorder %s2304_s20, %s2297_s1 }
  0x4f   : > { %p2301_p8 = pneg %p2300_p1  ;;  %p2307_p6 = por %p2306_p2, %p2305_p9 }
  0x51   : > { %p2308_p13 = pnand %p2307_p6, %p2301_p8 }
  0x53   : > { %2311 = shalt.err (!%p2308_p13)
}
  0x54   : > { %2162 = dma.hbm_to_vmem [thread:$0]  (!%p2578_p0), %s2636_s9, 128, %s2639_s10, %s211_s23  }
  0x55   : > { %s253_s19 = scalar_lea.vmem [#allocation7], %s2571_s6  ;;  %s2312_s14 = scalar_lea.hbm %s2645_s5, 128 }
  0x56   : > { %s261_s29 = sshll.u32 %s253_s19, 4  ;;  %p2313_p11 = scmp.ne.s32.totalorder %s2645_s5, %s2312_s14  ;;  %s262_s29 = int_to_ptr.vmem [resolvable:$true] %s261_s29 }
  0x57   : > { %s2317_s26 = scalar_lea.hbm %s3007_s2, 256  ;;  %p2318_p5 = scmp.lt.u32.totalorder %s2645_s5, %s3007_s2 }
  0x58   : > { %p2315_p2 = pnand %p2313_p11, %p2600_p4  ;;  %p2319_p7 = scmp.lt.u32.totalorder %s2317_s26, %s2312_s14 }
  0x59   : > { %p2321_p12 = scmp.lt.u32.totalorder %s2312_s14, %s2645_s5 }
  0x5a   : > { %p2316_p3 = pneg %p2315_p2  ;;  %p2320_p10 = por %p2319_p7, %p2318_p5 }
  0x5c   : > { %p2322_p1 = por %p2321_p12, %p2320_p10 }
  0x5e   : > { %p2323_p8 = pnand %p2322_p1, %p2316_p3 }
  0x60   : > { %2326 = shalt.err (!%p2323_p8)
}
  0x61   : > { %s2327_s23 = scalar_lea.vmem %s262_s29, 128  ;;  %s2464_s6 = smov [#allocation7]  }
  0x62   : > { %p2328_p9 = scmp.ne.s32.totalorder %s262_s29, %s2327_s23  ;;  %s2332_s9 = sshll.u32 %s2464_s6, 4  ;;  %s2333_s9 = int_to_ptr.vmem [resolvable:$false] %s2332_s9 }
  0x63   : > { %s2334_s10 = scalar_lea.vmem %s2333_s9, 256  ;;  %p2335_p11 = scmp.lt.s32.totalorder %s262_s29, %s2333_s9 }
  0x64   : > { %p2330_p6 = pnand %p2328_p9, %p2600_p4  ;;  %p2336_p2 = scmp.lt.s32.totalorder %s2334_s10, %s2327_s23 }
  0x66   : > { %p2331_p13 = pneg %p2330_p6  ;;  %p2337_p0 = por %p2336_p2, %p2335_p11 }
  0x68   : > { %p2338_p5 = pnand %p2337_p0, %p2331_p13 }
  0x6a   : > { %2341 = shalt.err (!%p2338_p5)
}
  0x6b   : > { %p3034_p7 = scmp.ne.s32.totalorder %s3027_s8, 0  ;;  %p3035_p3 = scmp.ne.s32.totalorder %s3032_s24, 0 }
  0x6c   : > { %s2692_s25 = sand.u32 (!%p3035_p3), 1, %s2444_s16   ;;  %p3036_p0 = scmp.ne.s32.totalorder (!%p3035_p3), %s3023_s27, 0 }
  0x6d   : > { %2168 = dma.hbm_to_vmem [thread:$0]  (!%p3034_p7), %s2645_s5, 128, %s262_s29, %s2594_s22  }
  0x6e   : > { %270 = sbr.rel (%p3035_p3) target bundleno = 5141 (0x1415), region = 32  ;;  %s2695_s12 = sshll.u32 (!%p3035_p3), %s2692_s25, 3 }
  0x6f   : > { %s273_s20 = scalar_lea.sflag (!%p3035_p3), [#allocation3], %s2692_s25  ;;  %s276_s19 = scalar_lea.vmem (!%p3035_p3), [#allocation2], %s2695_s12 }
  0x75   : > { %2423 = dma.done.wait (%p3036_p0), %s273_s20, 128  }
  0x76   : > { %2425 = vsyncadd (%p3036_p0), %s273_s20, 4294967168  ;;  %s281_s8 = sand.u32 1, %s2531_s21   ;;  %s285_s24 = scalar_lea.vmem [#allocation5], %s2695_s12 }
  0x77   : > { %s282_s22 = scalar_lea.sflag [#allocation6], %s281_s8 }
  0x78   : > { %2427 = dma.done.wait (%p3036_p0), %s282_s22, 256  }
  0x79   : > { %2429 = vsyncadd (%p3036_p0), %s282_s22, 4294967040  ;;  %v2465_v0 = vmov 0.0   ;;  %vm2466_vm0 = vmmov 0   ;;  %vm340_vm1 = vcmask 261120   ;;  %v2715_v1 = vld [vmem:[%s285_s24] sm:$0xff]  ;;  %v337_v2 = vld [vmem:[%s276_s19] sm:$0xff] }
  0x7a   : > { %2037 = vmatprep.subr.mxu0 %v2465_v0  ;;  %2039 = vmatprep.mubr.msk.f32.mxu0 %vm2466_vm0, %v2465_v0  ;;  %v2719_v3 = vmul.f32 0.17677669, %v337_v2  ;;  %vm417_vm2 = vcmask 64512   ;;  %vm428_vm3 = vcmask 1043456   ;;  %v2467_v7 = vmov 0   ;;  %s2468_s21 = smov 96  }
  0x7b   : > { %2042 = vmatprep.subr.bf16.mxu1 %v2465_v0  ;;  %2044 = vmatprep.mubr.msk.bf16.mxu1 %vm2466_vm0, %v2465_v0  ;;  %v2730_v8 = vsel %vm428_vm3, 1065369472, %v2467_v7  ;;  %s294_s27 = scalar_lea.vmem [#allocation7], %s2695_s12  ;;  %s1949_s5 = sshll.u32 %s2692_s25, 5 }
  0x7c   : > { %2038 = vmatpush3.xpose.msk.msra.mxu0 %vm340_vm1, %v2715_v1  ;;  %2234 = vset.pattern.permute.xlu0 %v2467_v7  ;;  %v2767_v46 = vld [vmem:[%s294_s27] sm:$0xff]  ;;  %s2772_s29 = scalar_lea.vmem [#allocation9], %s1949_s5  ;;  %s2469_s14 = smov 64  }
  0x7d   : > { %2048 = vmatprep.subr.bf16.mxu0 %v2465_v0  ;;  %2235 = vset.pattern.permute.xlu1 %v2467_v7  ;;  %s2470_s11 = smov 32   ;;  %s1996_s13 = sshll.u32 %s2452_s18, 9 }
  0x7e   : > { %2043 = vmatpush3.bf16.msra.mxu1 %v2730_v8  ;;  %s1765_s26 = sshll.u32 %s2772_s29, 4  ;;  %s2920_s23 = scalar_lea.hbm %s3009_s4, %s1996_s13  ;;  %s2922_s26 = int_to_ptr.vmem [resolvable:$true] %s1765_s26 }
  0x7f   : > { %2040 = vmatmul.mubr.msk.f32.vlgmr.msra.gmra.mrb[0].mxu0 %vm340_vm1, %v2719_v3  ;;  %2054 = vmatprep.subr.bf16.mxu1 %v2465_v0  ;;  %s1734_s6 = scalar_lea.sflag [#allocation10], %s2692_s25  ;;  %s2342_s9 = scalar_lea.vmem %s2922_s26, 512 }
  0x80   : > { %2050 = vmatprep.mubr.msk.bf16.mxu0 %vm2466_vm0, %v2465_v0  ;;  %2049 = vmatpush3.bf16.msra.mxu0 %v2730_v8  ;;  %p2343_p4 = scmp.ne.s32.totalorder %s2922_s26, %s2342_s9  ;;  %p3037_p10 = scmp.ne.s32.totalorder %s3024_s28, 0 }
  0x81   : > { %2060 = vmatprep.subr.mxu0 %v2465_v0  ;;  %s2471_s10 = smov [#allocation9]  }
  0x82   : > { %p2344_p12 = pnand %p2343_p4, %p3037_p10  ;;  %s2346_s20 = sshll.u32 %s2471_s10, 4  ;;  %s2347_s20 = int_to_ptr.vmem [resolvable:$false] %s2346_s20 }
  0x83   : > { %s2348_s19 = scalar_lea.vmem %s2347_s20, 1024  ;;  %p2349_p8 = scmp.lt.s32.totalorder %s2922_s26, %s2347_s20 }
  0x84   : > { %p2345_p1 = pneg %p2344_p12  ;;  %p2350_p9 = scmp.lt.s32.totalorder %s2348_s19, %s2342_s9 }
  0x86   : > { %p2351_p6 = por %p2350_p9, %p2349_p8 }
  0x88   : > { %p2352_p13 = pnand %p2351_p6, %p2345_p1 }
 0x152   : > { %v2726_v4 = vpop.f32.mrb[0].mxu0 }
 0x153   : > { %v2041_v5 = vpop.f32.mrb[1].mxu0  ;;  %v418_v6 = vsel %vm417_vm2, %v2726_v4, -inf }
 0x154   : > { %419 = vmax.xlane.f32.xlu0 %v418_v6 }
 0x1e1   : > { %v420_v9 = vpop.xlane.xlu0 %419 }
 0x1e2   : > { %vm421_vm4 = vcmp.ge.f32.partialorder %v2726_v4, %v420_v9 }
 0x1e3   : > { %v1952_v10 = vsel %vm421_vm4, 1.0, %v2465_v0  ;;  %v473_v11 = vsel %vm421_vm4, -inf, %v2726_v4 }
 0x1e4   : > { %v424_v12 = vpack.c.bf16 %v1952_v10, %v1952_v10  ;;  %v474_v13 = vsel %vm417_vm2, %v473_v11, -inf }
 0x1e5   : > { %475 = vmax.xlane.f32.xlu0 %v474_v13 }
 0x1e6   : > { %2045 = vmatmul.mubr.msk.bf16.vlgmr.msra.gmra.mrb[0].mxu1 %vm417_vm2, %v424_v12 }
 0x1e7   : > { %2055 = vmatpush3.bf16.msra.mxu1 %v2730_v8  ;;  %2056 = vmatprep.mubr.msk.bf16.mxu1 %vm2466_vm0, %v2465_v0 }
 0x1e8   : > { %2070 = vmatprep.subr.bf16.mxu1 %v2465_v0 }
 0x272   : > { %v476_v14 = vpop.xlane.xlu0 %475 }
 0x273   : > { %vm478_vm5 = vcmp.ge.f32.partialorder %v2726_v4, %v476_v14  ;;  %vm527_vm6 = vcmp.ge.f32.partialorder %v473_v11, %v476_v14 }
 0x274   : > { %v1954_v15 = vsel %vm478_vm5, 1.0, %v2465_v0  ;;  %v528_v16 = vsel %vm527_vm6, -inf, %v473_v11 }
 0x275   : > { %v481_v17 = vpack.c.bf16 %v1954_v15, %v1954_v15  ;;  %v529_v18 = vsel %vm417_vm2, %v528_v16, -inf }
 0x276   : > { %530 = vmax.xlane.f32.xlu1 %v529_v18 }
 0x277   : > { %2051 = vmatmul.mubr.msk.bf16.vlgmr.msra.gmra.mrb[4].mxu0 %vm417_vm2, %v481_v17 }
 0x278   : > { %2062 = vmatprep.mubr.msk.f32.mxu0 %vm2466_vm0, %v2465_v0  ;;  %2061 = vmatpush3.msra.mxu0 %v2767_v46 }
 0x279   : > { %2065 = vmatprep.subr.mxu0 %v2465_v0 }
 0x2b9   : > { %v466_v19 = vpop.f32.mrb[0].mxu1 }
 0x2ba   : > { %v2046_v20 = vpop.f32.mrb[1].mxu1  ;;  %vm472_vm9 = vcmp.ge.f32.partialorder %v466_v19, 4.0 }
 0x2bb   : > { %v469_v21 = vpop.f32.mrb[2].mxu1  ;;  %v477_v30 = vsel %vm472_vm9, %v420_v9, %v476_v14 }
 0x2bc   : > { %v2047_v22 = vpop.f32.mrb[3].mxu1 }
 0x303   : > { %v531_v23 = vpop.xlane.xlu1 %530 }
 0x304   : > { %vm533_vm7 = vcmp.ge.f32.partialorder %v2726_v4, %v531_v23  ;;  %vm582_vm8 = vcmp.ge.f32.partialorder %v528_v16, %v531_v23 }
 0x305   : > { %v1956_v24 = vsel %vm533_vm7, 1.0, %v2465_v0  ;;  %v583_v25 = vsel %vm582_vm8, -inf, %v528_v16 }
 0x306   : > { %v536_v26 = vpack.c.bf16 %v1956_v24, %v1956_v24  ;;  %v584_v27 = vsel %vm417_vm2, %v583_v25, -inf }
 0x307   : > { %585 = vmax.xlane.f32.xlu1 %v584_v27 }
 0x308   : > { %2057 = vmatmul.mubr.msk.bf16.vlgmr.msra.gmra.mrb[4].mxu1 %vm417_vm2, %v536_v26 }
 0x309   : > { %2071 = vmatpush3.bf16.msra.mxu1 %v2730_v8  ;;  %2072 = vmatprep.mubr.msk.bf16.mxu1 %vm2466_vm0, %v2465_v0 }
 0x30a   : > { %2082 = vmatprep.subr.bf16.mxu1 %v2465_v0 }
 0x318   : > { %685 = vrot.lane.b32.xlu1 %v2715_v1, %s2468_s21 }
 0x34a   : > { %v519_v28 = vpop.f32.mrb[4].mxu0 }
 0x34b   : > { %vm525_vm10 = vcmp.ge.f32.partialorder %v519_v28, 4.0  ;;  %v2052_v29 = vpop.f32.mrb[5].mxu0 }
 0x34c   : > { %vm526_vm11 = vmor %vm472_vm9, %vm525_vm10  ;;  %v522_v31 = vpop.f32.mrb[6].mxu0 }
 0x34d   : > { %v532_v32 = vsel %vm526_vm11, %v477_v30, %v531_v23  ;;  %v2053_v33 = vpop.f32.mrb[7].mxu0 }
 0x394   : > { %v586_v36 = vpop.xlane.xlu1 %585 }
 0x398   : > { %v686_v47 = vpop.permute.xlu1 %685 }
 0x3db   : > { %v574_v34 = vpop.f32.mrb[4].mxu1 }
 0x3dc   : > { %vm580_vm12 = vcmp.ge.f32.partialorder %v574_v34, 4.0  ;;  %v2058_v35 = vpop.f32.mrb[5].mxu1 }
 0x3dd   : > { %vm581_vm13 = vmor %vm526_vm11, %vm580_vm12  ;;  %v577_v37 = vpop.f32.mrb[6].mxu1 }
 0x3de   : > { %v2059_v38 = vpop.f32.mrb[7].mxu1  ;;  %v587_v39 = vsel %vm581_vm13, %v532_v32, %v586_v36 }
 0x3df   : > { %590 = vperm.xlu0 %2234, %v587_v39  }
 0x45e   : > { %v591_v40 = vpop.permute.xlu0 %590 }
 0x45f   : > { %vm593_vm14 = vcmp.ge.f32.partialorder %v2726_v4, %v591_v40 }
 0x460   : > { %v594_v41 = vsel %vm593_vm14, %v2726_v4, -inf }
 0x461   : > { %v595_v42 = vsub.f32 %v594_v41, %v420_v9 }
 0x463   : > { %v596_v43 = vmul.f32 1.442695, %v595_v42 }
 0x465   : > { %2236 = vpow2.f32 %v596_v43 }
 0x46f   : > { %v2237_v44 = vpop.eup %2236 }
 0x470   : > { %v598_v45 = vsel %vm417_vm2, %v2237_v44, 0.0 }
 0x471   : > { %599 = vadd.xlane.f32.xlu1 %v598_v45 }
 0x482   : > { %682 = vrot.lane.b32.xlu1 %v2719_v3, %s2468_s21 }
 0x4fe   : > { %v600_v48 = vpop.xlane.xlu1 %599 }
 0x4ff   : > { %2238 = vrcp.f32 %v600_v48 }
 0x502   : > { %v683_v51 = vpop.permute.xlu1 %682 }
 0x509   : > { %v2239_v49 = vpop.eup %2238 }
 0x50a   : > { %v602_v50 = vmul.f32 %v2239_v49, %v2237_v44 }
 0x50c   : > { %677 = vst.msk [vmem:[%s2772_s29] sm:$0xff] %vm417_vm2, %v602_v50  ;;  %2063 = vmatmul.mubr.msk.f32.vlgmr.msra.gmra.mrb[2].mxu0 %vm417_vm2, %v602_v50 }
 0x50d   : > { %2066 = vmatpush3.xpose.msk.msra.mxu0 %vm340_vm1, %v686_v47  ;;  %2067 = vmatprep.mubr.msk.f32.mxu0 %vm2466_vm0, %v2465_v0 }
 0x50e   : > { %2076 = vmatprep.subr.bf16.mxu0 %v2465_v0 }
 0x510   : > { %2068 = vmatmul.mubr.msk.f32.vlgmr.msra.gmra.mrb[8].mxu0 %vm340_vm1, %v683_v51 }
 0x511   : > { %2077 = vmatpush3.bf16.msra.mxu0 %v2730_v8  ;;  %2078 = vmatprep.mubr.msk.bf16.mxu0 %vm2466_vm0, %v2465_v0 }
 0x512   : > { %2088 = vmatprep.subr.mxu0 %v2465_v0 }
 0x5df   : > { %v2786_v52 = vpop.f32.mrb[2].mxu0 }
 0x5e0   : > { %v2064_v53 = vpop.f32.mrb[3].mxu0 }
 0x5e3   : > { %v2788_v54 = vpop.f32.mrb[8].mxu0 }
 0x5e4   : > { %v2069_v55 = vpop.f32.mrb[9].mxu0  ;;  %v761_v56 = vsel %vm417_vm2, %v2788_v54, -inf }
 0x5e5   : > { %762 = vmax.xlane.f32.xlu1 %v761_v56 }
 0x672   : > { %v763_v57 = vpop.xlane.xlu1 %762 }
 0x673   : > { %vm764_vm15 = vcmp.ge.f32.partialorder %v2788_v54, %v763_v57 }
 0x674   : > { %v1961_v58 = vsel %vm764_vm15, 1.0, %v2465_v0  ;;  %v812_v59 = vsel %vm764_vm15, -inf, %v2788_v54 }
 0x675   : > { %v767_v60 = vpack.c.bf16 %v1961_v58, %v1961_v58  ;;  %v813_v61 = vsel %vm417_vm2, %v812_v59, -inf }
 0x676   : > { %814 = vmax.xlane.f32.xlu0 %v813_v61 }
 0x677   : > { %2073 = vmatmul.mubr.msk.bf16.vlgmr.msra.gmra.mrb[8].mxu1 %vm417_vm2, %v767_v60 }
 0x678   : > { %2083 = vmatpush3.bf16.msra.mxu1 %v2730_v8  ;;  %2084 = vmatprep.mubr.msk.bf16.mxu1 %vm2466_vm0, %v2465_v0 }
 0x679   : > { %2098 = vmatprep.subr.bf16.mxu1 %v2465_v0 }
 0x703   : > { %v815_v62 = vpop.xlane.xlu0 %814 }
 0x704   : > { %vm817_vm3 = vcmp.ge.f32.partialorder %v2788_v54, %v815_v62  ;;  %vm866_vm4 = vcmp.ge.f32.partialorder %v812_v59, %v815_v62 }
 0x705   : > { %v1963_v63 = vsel %vm817_vm3, 1.0, %v2465_v0  ;;  %v867_v2 = vsel %vm866_vm4, -inf, %v812_v59 }
 0x706   : > { %v820_v4 = vpack.c.bf16 %v1963_v63, %v1963_v63  ;;  %v868_v5 = vsel %vm417_vm2, %v867_v2, -inf }
 0x707   : > { %869 = vmax.xlane.f32.xlu1 %v868_v5 }
 0x708   : > { %2079 = vmatmul.mubr.msk.bf16.vlgmr.msra.gmra.mrb[12].mxu0 %vm417_vm2, %v820_v4 }
 0x709   : > { %2090 = vmatprep.mubr.msk.f32.mxu0 %vm2466_vm0, %v2465_v0 }
 0x74a   : > { %v805_v6 = vpop.f32.mrb[8].mxu1 }
 0x74b   : > { %v2074_v7 = vpop.f32.mrb[9].mxu1  ;;  %vm811_vm7 = vcmp.ge.f32.partialorder %v805_v6, 4.0 }
 0x74c   : > { %v808_v9 = vpop.f32.mrb[10].mxu1  ;;  %v816_v18 = vsel %vm811_vm7, %v763_v57, %v815_v62 }
 0x74d   : > { %v2075_v10 = vpop.f32.mrb[11].mxu1 }
 0x794   : > { %v870_v11 = vpop.xlane.xlu1 %869 }
 0x795   : > { %vm872_vm5 = vcmp.ge.f32.partialorder %v2788_v54, %v870_v11  ;;  %vm921_vm6 = vcmp.ge.f32.partialorder %v867_v2, %v870_v11 }
 0x796   : > { %v1965_v12 = vsel %vm872_vm5, 1.0, %v2465_v0  ;;  %v922_v13 = vsel %vm921_vm6, -inf, %v867_v2 }
 0x797   : > { %v875_v14 = vpack.c.bf16 %v1965_v12, %v1965_v12  ;;  %v923_v15 = vsel %vm417_vm2, %v922_v13, -inf }
 0x798   : > { %924 = vmax.xlane.f32.xlu1 %v923_v15 }
 0x799   : > { %2085 = vmatmul.mubr.msk.bf16.vlgmr.msra.gmra.mrb[12].mxu1 %vm417_vm2, %v875_v14 }
 0x79a   : > { %2099 = vmatpush3.bf16.msra.mxu1 %v2730_v8  ;;  %2100 = vmatprep.mubr.msk.bf16.mxu1 %vm2466_vm0, %v2465_v0 }
 0x79b   : > { %2110 = vmatprep.subr.bf16.mxu1 %v2465_v0 }
 0x7db   : > { %v858_v16 = vpop.f32.mrb[12].mxu0 }
 0x7dc   : > { %vm864_vm8 = vcmp.ge.f32.partialorder %v858_v16, 4.0  ;;  %v2080_v17 = vpop.f32.mrb[13].mxu0 }
 0x7dd   : > { %vm865_vm9 = vmor %vm811_vm7, %vm864_vm8  ;;  %v861_v19 = vpop.f32.mrb[14].mxu0 }
 0x7de   : > { %v871_v20 = vsel %vm865_vm9, %v816_v18, %v870_v11  ;;  %v2081_v21 = vpop.f32.mrb[15].mxu0 }
 0x825   : > { %v925_v24 = vpop.xlane.xlu1 %924 }
 0x86c   : > { %v913_v22 = vpop.f32.mrb[12].mxu1 }
 0x86d   : > { %vm919_vm10 = vcmp.ge.f32.partialorder %v913_v22, 4.0  ;;  %v2086_v23 = vpop.f32.mrb[13].mxu1 }
 0x86e   : > { %vm920_vm11 = vmor %vm865_vm9, %vm919_vm10  ;;  %v916_v25 = vpop.f32.mrb[14].mxu1 }
 0x86f   : > { %v2087_v26 = vpop.f32.mrb[15].mxu1  ;;  %v926_v27 = vsel %vm920_vm11, %v871_v20, %v925_v24 }
 0x870   : > { %929 = vperm.xlu1 %2235, %v926_v27  }
 0x874   : > { %1029 = vrot.lane.b32.xlu1 %v2715_v1, %s2469_s14 }
 0x878   : > { %1026 = vrot.lane.b32.xlu1 %v2719_v3, %s2469_s14 }
 0x8ef   : > { %v930_v28 = vpop.permute.xlu1 %929 }
 0x8f0   : > { %vm932_vm12 = vcmp.ge.f32.partialorder %v2788_v54, %v930_v28 }
 0x8f1   : > { %v933_v29 = vsel %vm932_vm12, %v2788_v54, -inf }
 0x8f2   : > { %v934_v30 = vsub.f32 %v933_v29, %v763_v57 }
 0x8f3   : > { %v1030_v36 = vpop.permute.xlu1 %1029 }
 0x8f4   : > { %v935_v31 = vmul.f32 1.442695, %v934_v30 }
 0x8f6   : > { %2240 = vpow2.f32 %v935_v31 }
 0x8f7   : > { %v1027_v39 = vpop.permute.xlu1 %1026 }
 0x900   : > { %v2241_v32 = vpop.eup %2240 }
 0x901   : > { %v937_v33 = vsel %vm417_vm2, %v2241_v32, 0.0 }
 0x902   : > { %938 = vadd.xlane.f32.xlu0 %v937_v33 }
 0x918   : > { %944 = vrot.lane.b32.xlu0 %v2767_v46, %s2468_s21 }
 0x98f   : > { %v939_v34 = vpop.xlane.xlu0 %938 }
 0x990   : > { %2242 = vrcp.f32 %v939_v34 }
 0x993   : > { %v945_v35 = vpop.permute.xlu0 %944 }
 0x994   : > { %2089 = vmatpush3.msra.mxu0 %v945_v35 }
 0x995   : > { %2093 = vmatprep.subr.mxu0 %v2465_v0 }
 0x99a   : > { %v2243_v37 = vpop.eup %2242 }
 0x99b   : > { %v941_v38 = vmul.f32 %v2243_v37, %v2241_v32 }
 0x99d   : > { %1968 = vst.msk [vmem:[%s2772_s29 + $0x8] sm:$0xff] %vm417_vm2, %v941_v38  ;;  %2091 = vmatmul.mubr.msk.f32.vlgmr.msra.gmra.mrb[10].mxu0 %vm417_vm2, %v941_v38 }
 0x99e   : > { %2094 = vmatpush3.xpose.msk.msra.mxu0 %vm340_vm1, %v1030_v36  ;;  %2095 = vmatprep.mubr.msk.f32.mxu0 %vm2466_vm0, %v2465_v0 }
 0x99f   : > { %2104 = vmatprep.subr.bf16.mxu0 %v2465_v0 }
 0x9a1   : > { %2096 = vmatmul.mubr.msk.f32.vlgmr.msra.gmra.mrb[16].mxu0 %vm340_vm1, %v1027_v39 }
 0x9a2   : > { %2105 = vmatpush3.bf16.msra.mxu0 %v2730_v8  ;;  %2106 = vmatprep.mubr.msk.bf16.mxu0 %vm2466_vm0, %v2465_v0 }
 0x9a3   : > { %2116 = vmatprep.subr.mxu0 %v2465_v0 }
 0xa70   : > { %v2837_v40 = vpop.f32.mrb[10].mxu0 }
 0xa71   : > { %v2092_v41 = vpop.f32.mrb[11].mxu0 }
 0xa74   : > { %v2839_v42 = vpop.f32.mrb[16].mxu0 }
 0xa75   : > { %v2097_v43 = vpop.f32.mrb[17].mxu0  ;;  %v1105_v44 = vsel %vm417_vm2, %v2839_v42, -inf }
 0xa76   : > { %1106 = vmax.xlane.f32.xlu1 %v1105_v44 }
 0xb03   : > { %v1107_v45 = vpop.xlane.xlu1 %1106 }
 0xb04   : > { %vm1108_vm13 = vcmp.ge.f32.partialorder %v2839_v42, %v1107_v45 }
 0xb05   : > { %v1971_v47 = vsel %vm1108_vm13, 1.0, %v2465_v0  ;;  %v1156_v48 = vsel %vm1108_vm13, -inf, %v2839_v42 }
 0xb06   : > { %v1111_v49 = vpack.c.bf16 %v1971_v47, %v1971_v47  ;;  %v1157_v50 = vsel %vm417_vm2, %v1156_v48, -inf }
 0xb07   : > { %1158 = vmax.xlane.f32.xlu0 %v1157_v50 }
 0xb08   : > { %2101 = vmatmul.mubr.msk.bf16.vlgmr.msra.gmra.mrb[16].mxu1 %vm417_vm2, %v1111_v49 }
 0xb09   : > { %2111 = vmatpush3.bf16.msra.mxu1 %v2730_v8  ;;  %2112 = vmatprep.mubr.msk.bf16.mxu1 %vm2466_vm0, %v2465_v0 }
 0xb0a   : > { %2126 = vmatprep.subr.bf16.mxu1 %v2465_v0 }
 0xb94   : > { %v1159_v51 = vpop.xlane.xlu0 %1158 }
 0xb95   : > { %vm1161_vm14 = vcmp.ge.f32.partialorder %v2839_v42, %v1159_v51  ;;  %vm1210_vm15 = vcmp.ge.f32.partialorder %v1156_v48, %v1159_v51 }
 0xb96   : > { %v1973_v53 = vsel %vm1161_vm14, 1.0, %v2465_v0  ;;  %v1211_v54 = vsel %vm1210_vm15, -inf, %v1156_v48 }
 0xb97   : > { %v1164_v55 = vpack.c.bf16 %v1973_v53, %v1973_v53  ;;  %v1212_v56 = vsel %vm417_vm2, %v1211_v54, -inf }
 0xb98   : > { %1213 = vmax.xlane.f32.xlu1 %v1212_v56 }
 0xb99   : > { %2107 = vmatmul.mubr.msk.bf16.vlgmr.msra.gmra.mrb[20].mxu0 %vm417_vm2, %v1164_v55 }
 0xb9a   : > { %2118 = vmatprep.mubr.msk.f32.mxu0 %vm2466_vm0, %v2465_v0 }
 0xbdb   : > { %v1149_v57 = vpop.f32.mrb[16].mxu1 }
 0xbdc   : > { %v2102_v58 = vpop.f32.mrb[17].mxu1  ;;  %vm1155_vm5 = vcmp.ge.f32.partialorder %v1149_v57, 4.0 }
 0xbdd   : > { %v1152_v59 = vpop.f32.mrb[18].mxu1  ;;  %v1160_v7 = vsel %vm1155_vm5, %v1107_v45, %v1159_v51 }
 0xbde   : > { %v2103_v60 = vpop.f32.mrb[19].mxu1 }
 0xc25   : > { %v1214_v61 = vpop.xlane.xlu1 %1213 }
 0xc26   : > { %vm1216_vm3 = vcmp.ge.f32.partialorder %v2839_v42, %v1214_v61  ;;  %vm1265_vm4 = vcmp.ge.f32.partialorder %v1211_v54, %v1214_v61 }
 0xc27   : > { %v1975_v62 = vsel %vm1216_vm3, 1.0, %v2465_v0  ;;  %v1266_v63 = vsel %vm1265_vm4, -inf, %v1211_v54 }
 0xc28   : > { %v1219_v2 = vpack.c.bf16 %v1975_v62, %v1975_v62  ;;  %v1267_v4 = vsel %vm417_vm2, %v1266_v63, -inf }
 0xc29   : > { %1268 = vmax.xlane.f32.xlu0 %v1267_v4 }
 0xc2a   : > { %2113 = vmatmul.mubr.msk.bf16.vlgmr.msra.gmra.mrb[20].mxu1 %vm417_vm2, %v1219_v2 }
 0xc2b   : > { %2127 = vmatpush3.bf16.msra.mxu1 %v2730_v8  ;;  %2128 = vmatprep.mubr.msk.bf16.mxu1 %vm2466_vm0, %v2465_v0 }
 0xc2c   : > { %2138 = vmatprep.subr.bf16.mxu1 %v2465_v0 }
 0xc6c   : > { %v1202_v5 = vpop.f32.mrb[20].mxu0 }
 0xc6d   : > { %vm1208_vm6 = vcmp.ge.f32.partialorder %v1202_v5, 4.0  ;;  %v2108_v6 = vpop.f32.mrb[21].mxu0 }
 0xc6e   : > { %vm1209_vm7 = vmor %vm1155_vm5, %vm1208_vm6  ;;  %v1205_v9 = vpop.f32.mrb[22].mxu0 }
 0xc6f   : > { %v1215_v10 = vsel %vm1209_vm7, %v1160_v7, %v1214_v61  ;;  %v2109_v11 = vpop.f32.mrb[23].mxu0 }
 0xcb6   : > { %v1269_v14 = vpop.xlane.xlu0 %1268 }
 0xcfd   : > { %v1257_v12 = vpop.f32.mrb[20].mxu1 }
 0xcfe   : > { %vm1263_vm8 = vcmp.ge.f32.partialorder %v1257_v12, 4.0  ;;  %v2114_v13 = vpop.f32.mrb[21].mxu1 }
 0xcff   : > { %vm1264_vm9 = vmor %vm1209_vm7, %vm1263_vm8  ;;  %v1260_v15 = vpop.f32.mrb[22].mxu1 }
 0xd00   : > { %v2115_v16 = vpop.f32.mrb[23].mxu1  ;;  %v1270_v17 = vsel %vm1264_vm9, %v1215_v10, %v1269_v14 }
 0xd01   : > { %1273 = vperm.xlu1 %2235, %v1270_v17  }
 0xd05   : > { %1373 = vrot.lane.b32.xlu1 %v2715_v1, %s2470_s11 }
 0xd09   : > { %1370 = vrot.lane.b32.xlu1 %v2719_v3, %s2470_s11 }
 0xd80   : > { %v1274_v18 = vpop.permute.xlu1 %1273 }
 0xd81   : > { %vm1276_vm10 = vcmp.ge.f32.partialorder %v2839_v42, %v1274_v18 }
 0xd82   : > { %v1277_v19 = vsel %vm1276_vm10, %v2839_v42, -inf }
 0xd83   : > { %v1278_v20 = vsub.f32 %v1277_v19, %v1107_v45 }
 0xd84   : > { %v1374_v3 = vpop.permute.xlu1 %1373 }
 0xd85   : > { %v1279_v21 = vmul.f32 1.442695, %v1278_v20 }
 0xd87   : > { %2244 = vpow2.f32 %v1279_v21 }
 0xd88   : > { %v1371_v27 = vpop.permute.xlu1 %1370 }
 0xd91   : > { %v2245_v22 = vpop.eup %2244 }
 0xd92   : > { %v1281_v23 = vsel %vm417_vm2, %v2245_v22, 0.0 }
 0xd93   : > { %1282 = vadd.xlane.f32.xlu0 %v1281_v23 }
 0xda9   : > { %1288 = vrot.lane.b32.xlu0 %v2767_v46, %s2469_s14 }
 0xe20   : > { %v1283_v1 = vpop.xlane.xlu0 %1282 }
 0xe21   : > { %2246 = vrcp.f32 %v1283_v1 }
 0xe24   : > { %v1289_v24 = vpop.permute.xlu0 %1288 }
 0xe25   : > { %2117 = vmatpush3.msra.mxu0 %v1289_v24 }
 0xe26   : > { %2121 = vmatprep.subr.mxu0 %v2465_v0 }
 0xe2b   : > { %v2247_v25 = vpop.eup %2246 }
 0xe2c   : > { %v1285_v26 = vmul.f32 %v2247_v25, %v2245_v22 }
 0xe2e   : > { %1978 = vst.msk [vmem:[%s2772_s29 + $0x10] sm:$0xff] %vm417_vm2, %v1285_v26  ;;  %2119 = vmatmul.mubr.msk.f32.vlgmr.msra.gmra.mrb[18].mxu0 %vm417_vm2, %v1285_v26 }
 0xe2f   : > { %2122 = vmatpush3.xpose.msk.msra.mxu0 %vm340_vm1, %v1374_v3  ;;  %2123 = vmatprep.mubr.msk.f32.mxu0 %vm2466_vm0, %v2465_v0 }
 0xe30   : > { %2132 = vmatprep.subr.bf16.mxu0 %v2465_v0 }
 0xe32   : > { %2124 = vmatmul.mubr.msk.f32.vlgmr.msra.gmra.mrb[24].mxu0 %vm340_vm1, %v1371_v27 }
 0xe33   : > { %2133 = vmatpush3.bf16.msra.mxu0 %v2730_v8  ;;  %2134 = vmatprep.mubr.msk.bf16.mxu0 %vm2466_vm0, %v2465_v0 }
 0xe34   : > { %2144 = vmatprep.subr.mxu0 %v2465_v0 }
 0xf01   : > { %v2888_v28 = vpop.f32.mrb[18].mxu0 }
 0xf02   : > { %v2120_v29 = vpop.f32.mrb[19].mxu0 }
 0xf05   : > { %v1445_v30 = vpop.f32.mrb[24].mxu0 }
 0xf06   : > { %v2125_v31 = vpop.f32.mrb[25].mxu0  ;;  %v1449_v32 = vsel %vm417_vm2, %v1445_v30, -inf }
 0xf07   : > { %1450 = vmax.xlane.f32.xlu1 %v1449_v32 }
 0xf94   : > { %v1451_v33 = vpop.xlane.xlu1 %1450 }
 0xf95   : > { %vm1452_vm11 = vcmp.ge.f32.partialorder %v1445_v30, %v1451_v33 }
 0xf96   : > { %v1981_v34 = vsel %vm1452_vm11, 1.0, %v2465_v0  ;;  %v1500_v35 = vsel %vm1452_vm11, -inf, %v1445_v30 }
 0xf97   : > { %v1455_v36 = vpack.c.bf16 %v1981_v34, %v1981_v34  ;;  %v1501_v37 = vsel %vm417_vm2, %v1500_v35, -inf }
 0xf98   : > { %1502 = vmax.xlane.f32.xlu0 %v1501_v37 }
 0xf99   : > { %2129 = vmatmul.mubr.msk.bf16.vlgmr.msra.gmra.mrb[24].mxu1 %vm417_vm2, %v1455_v36 }
 0xf9a   : > { %2139 = vmatpush3.bf16.msra.mxu1 %v2730_v8  ;;  %2140 = vmatprep.mubr.msk.bf16.mxu1 %vm2466_vm0, %v2465_v0 }
0x1025   : > { %v1503_v38 = vpop.xlane.xlu0 %1502 }
0x1026   : > { %vm1505_vm12 = vcmp.ge.f32.partialorder %v1445_v30, %v1503_v38  ;;  %vm1554_vm13 = vcmp.ge.f32.partialorder %v1500_v35, %v1503_v38 }
0x1027   : > { %v1983_v39 = vsel %vm1505_vm12, 1.0, %v2465_v0  ;;  %v1555_v41 = vsel %vm1554_vm13, -inf, %v1500_v35 }
0x1028   : > { %v1508_v42 = vpack.c.bf16 %v1983_v39, %v1983_v39  ;;  %v1556_v43 = vsel %vm417_vm2, %v1555_v41, -inf }
0x1029   : > { %1557 = vmax.xlane.f32.xlu0 %v1556_v43 }
0x102a   : > { %2135 = vmatmul.mubr.msk.bf16.vlgmr.msra.gmra.mrb[28].mxu0 %vm417_vm2, %v1508_v42 }
0x102b   : > { %2146 = vmatprep.mubr.msk.f32.mxu0 %vm2466_vm0, %v2465_v0 }
0x106c   : > { %v1493_v44 = vpop.f32.mrb[24].mxu1 }
0x106d   : > { %v2130_v8 = vpop.f32.mrb[25].mxu1  ;;  %vm1499_vm3 = vcmp.ge.f32.partialorder %v1493_v44, 4.0 }
0x106e   : > { %v1496_v45 = vpop.f32.mrb[26].mxu1  ;;  %v1504_v56 = vsel %vm1499_vm3, %v1451_v33, %v1503_v38 }
0x106f   : > { %v2131_v47 = vpop.f32.mrb[27].mxu1 }
0x10b6   : > { %v1558_v48 = vpop.xlane.xlu0 %1557 }
0x10b7   : > { %vm1560_vm14 = vcmp.ge.f32.partialorder %v1445_v30, %v1558_v48  ;;  %vm1609_vm15 = vcmp.ge.f32.partialorder %v1555_v41, %v1558_v48 }
0x10b8   : > { %v1985_v49 = vsel %vm1560_vm14, 1.0, %v2465_v0  ;;  %v1610_v50 = vsel %vm1609_vm15, -inf, %v1555_v41 }
0x10b9   : > { %v1563_v51 = vpack.c.bf16 %v1985_v49, %v1985_v49  ;;  %v1611_v53 = vsel %vm417_vm2, %v1610_v50, -inf }
0x10ba   : > { %1612 = vmax.xlane.f32.xlu1 %v1611_v53 }
0x10bb   : > { %2141 = vmatmul.mubr.msk.bf16.vlgmr.msra.gmra.mrb[28].mxu1 %vm417_vm2, %v1563_v51 }
0x10fd   : > { %v1546_v54 = vpop.f32.mrb[28].mxu0 }
0x10fe   : > { %vm1552_vm4 = vcmp.ge.f32.partialorder %v1546_v54, 4.0  ;;  %v2136_v55 = vpop.f32.mrb[29].mxu0 }
0x10ff   : > { %vm1553_vm0 = vmor %vm1499_vm3, %vm1552_vm4  ;;  %v1549_v57 = vpop.f32.mrb[30].mxu0 }
0x1100   : > { %v1559_v58 = vsel %vm1553_vm0, %v1504_v56, %v1558_v48  ;;  %v2137_v59 = vpop.f32.mrb[31].mxu0 }
0x1147   : > { %v1613_v0 = vpop.xlane.xlu1 %1612 }
0x118e   : > { %v1601_v60 = vpop.f32.mrb[28].mxu1 }
0x118f   : > { %vm1607_vm5 = vcmp.ge.f32.partialorder %v1601_v60, 4.0  ;;  %v2142_v61 = vpop.f32.mrb[29].mxu1 }
0x1190   : > { %vm1608_vm6 = vmor %vm1553_vm0, %vm1607_vm5  ;;  %v1604_v62 = vpop.f32.mrb[30].mxu1 }
0x1191   : > { %v2143_v63 = vpop.f32.mrb[31].mxu1  ;;  %v1614_v2 = vsel %vm1608_vm6, %v1559_v58, %v1613_v0 }
0x1192   : > { %1617 = vperm.xlu0 %2234, %v1614_v2  }
0x1196   : > { %1711 = vrot.lane.b32.xlu0 %v2837_v40, %s2470_s11 }
0x1211   : > { %v1618_v4 = vpop.permute.xlu0 %1617 }
0x1212   : > { %vm1620_vm7 = vcmp.ge.f32.partialorder %v1445_v30, %v1618_v4 }
0x1213   : > { %v1621_v5 = vsel %vm1620_vm7, %v1445_v30, -inf }
0x1214   : > { %v1622_v6 = vsub.f32 %v1621_v5, %v1451_v33 }
0x1216   : > { %v1623_v7 = vmul.f32 1.442695, %v1622_v6 }
0x1218   : > { %2248 = vpow2.f32 %v1623_v7 }
0x1222   : > { %v2249_v9 = vpop.eup %2248 }
0x1223   : > { %v1625_v10 = vsel %vm417_vm2, %v2249_v9, 0.0 }
0x1224   : > { %1626 = vadd.xlane.f32.xlu1 %v1625_v10 }
0x1235   : > { %1632 = vrot.lane.b32.xlu1 %v2767_v46, %s2470_s11 }
0x1239   : > { %1715 = vrot.lane.b32.xlu1 %v2888_v28, %s2469_s14 }
0x12b1   : > { %v1627_v40 = vpop.xlane.xlu1 %1626 }
0x12b2   : > { %2250 = vrcp.f32 %v1627_v40 }
0x12b5   : > { %v1633_v11 = vpop.permute.xlu1 %1632 }
0x12b6   : > { %2145 = vmatpush3.msra.mxu0 %v1633_v11 }
0x12bc   : > { %v2251_v12 = vpop.eup %2250 }
0x12bd   : > { %v1629_v13 = vmul.f32 %v2251_v12, %v2249_v9 }
0x12bf   : > { %1988 = vst.msk [vmem:[%s2772_s29 + $0x18] sm:$0xff] %vm417_vm2, %v1629_v13  ;;  %2147 = vmatmul.mubr.msk.f32.vlgmr.msra.gmra.mrb[26].mxu0 %vm417_vm2, %v1629_v13 }
0x12c0   : > { %2355 = shalt.err (!%p2352_p13)
}
0x12c1   : > { %s2356_s8 = scalar_lea.hbm %s2920_s23, 512  ;;  %s2360_s27 = scalar_lea.hbm %s3009_s4, 1024 }
0x12c2   : > { %p2357_p11 = scmp.ne.s32.totalorder %s2920_s23, %s2356_s8  ;;  %p2361_p7 = scmp.lt.u32.totalorder %s2920_s23, %s3009_s4 }
0x12c3   : > { %p2362_p3 = scmp.lt.u32.totalorder %s2360_s27, %s2356_s8  ;;  %p2364_p4 = scmp.lt.u32.totalorder %s2356_s8, %s2920_s23 }
0x12c4   : > { %p2358_p2 = pnand %p2357_p11, %p3037_p10 }
0x12c5   : > { %p2363_p0 = por %p2362_p3, %p2361_p7 }
0x12c6   : > { %p2359_p5 = pneg %p2358_p2 }
0x12c7   : > { %p2365_p12 = por %p2364_p4, %p2363_p0 }
0x12c9   : > { %p2366_p1 = pnand %p2365_p12, %p2359_p5 }
0x12cb   : > { %2369 = shalt.err (!%p2366_p1)
}
0x12cc   : > { %s2472_s14 = smov 128   ;;  %s2473_s11 = smov 8   ;;  %v1712_v15 = vpop.permute.xlu0 %1711  ;;  %vm1723_vm2 = vcmask 523264   ;;  %v1716_v16 = vpop.permute.xlu1 %1715  ;;  %vm1725_vm8 = vcmask 785408  }
0x12cd   : > { %2156 = dma.vmem_to_hbm [thread:$0]  (%p3037_p10), %s2922_s26, 512, %s2920_s23, %s1734_s6, %s2472_s14, %s2472_s14, %s2473_s11   ;;  %v1722_v17 = vsel %vm340_vm1, %v2786_v52, %v1712_v15 }
0x12ce   : > { %s1991_s13 = sshll.u32 %s2452_s18, 7  ;;  %s326_s1 = scalar_lea.vmem [#allocation8], %s2695_s12  ;;  %v1724_v18 = vsel %vm1723_vm2, %v1722_v17, %v1716_v16 }
0x12cf   : > { %s1749_s7 = sshll.u32 %s326_s1, 4  ;;  %s2956_s23 = scalar_lea.hbm %s3008_s3, %s1991_s13  ;;  %s2958_s7 = int_to_ptr.vmem [resolvable:$true] %s1749_s7 }
0x12d0   : > { %s1729_s18 = scalar_lea.sflag [#allocation4], %s2692_s25  ;;  %s2370_s12 = scalar_lea.vmem %s2958_s7, 128 }
0x12d1   : > { %p2371_p8 = scmp.ne.s32.totalorder %s2958_s7, %s2370_s12 }
0x12d3   : > { %p2372_p9 = pnand %p2371_p8, %p3037_p10 }
0x12d5   : > { %p2373_p6 = pneg %p2372_p9 }
0x1392   : > { %v1704_v46 = vpop.f32.mrb[26].mxu0 }
0x1393   : > { %1719 = vrot.lane.b32.xlu0 %v1704_v46, %s2468_s21  ;;  %v2148_v14 = vpop.f32.mrb[27].mxu0  ;;  %s2474_s21 = smov [#allocation8]  }
0x1394   : > { %s2374_s6 = sshll.u32 %s2474_s21, 4  ;;  %s2375_s6 = int_to_ptr.vmem [resolvable:$false] %s2374_s6 }
0x1395   : > { %s2376_s10 = scalar_lea.vmem %s2375_s6, 256  ;;  %p2377_p13 = scmp.lt.s32.totalorder %s2958_s7, %s2375_s6 }
0x1396   : > { %p2378_p11 = scmp.lt.s32.totalorder %s2376_s10, %s2370_s12 }
0x1398   : > { %p2379_p2 = por %p2378_p11, %p2377_p13 }
0x139a   : > { %p2380_p5 = pnand %p2379_p2, %p2373_p6 }
0x1405   : > { %v1720_v19 = vpop.permute.xlu0 %1719 }
0x1406   : > { %v1726_v20 = vsel %vm1725_vm8, %v1724_v18, %v1720_v19 }
0x1407   : > { %1727 = vst [vmem:[%s326_s1] sm:$0xff] %v1726_v20 }
0x1408   : > { %2383 = shalt.err (!%p2380_p5)
}
0x1409   : > { %s2384_s25 = scalar_lea.hbm %s2956_s23, 128  ;;  %s2388_s8 = scalar_lea.hbm %s3008_s3, 256 }
0x140a   : > { %p2385_p7 = scmp.ne.s32.totalorder %s2956_s23, %s2384_s25  ;;  %p2389_p4 = scmp.lt.u32.totalorder %s2956_s23, %s3008_s3 }
0x140b   : > { %p2390_p12 = scmp.lt.u32.totalorder %s2388_s8, %s2384_s25  ;;  %p2392_p8 = scmp.lt.u32.totalorder %s2384_s25, %s2956_s23 }
0x140c   : > { %p2386_p3 = pnand %p2385_p7, %p3037_p10 }
0x140d   : > { %p2391_p1 = por %p2390_p12, %p2389_p4 }
0x140e   : > { %p2387_p0 = pneg %p2386_p3 }
0x140f   : > { %p2393_p9 = por %p2392_p8, %p2391_p1 }
0x1411   : > { %p2394_p6 = pnand %p2393_p9, %p2387_p0 }
0x1413   : > { %2397 = shalt.err (!%p2394_p6)
}
0x1414   : > { %2155 = dma.vmem_to_hbm [thread:$0]  (%p3037_p10), %s2958_s7, 128, %s2956_s23, %s1729_s18  }
0x1415 PF: > { %s3038_s27 = sld [smem:[#allocation16_spill]]  ;;  %s1780_s5 = sand.u32 1, %s2440_s15  }
0x1416   : > { %p3039_p13 = scmp.ne.s32.totalorder %s3026_s30, 0  ;;  %s1781_s29 = scalar_lea.sflag [#allocation4], %s1780_s5 }
0x141b   : > { %p3040_p11 = scmp.ge.s32.totalorder %s3038_s27, 2 }
0x141d   : > { %p2170_p2 = pnand %p3040_p11, %p3039_p13 }
0x141f   : > { %2431 = dma.done.wait (!%p2170_p2), %s1781_s29, 128  }
0x1420   : > { %2433 = vsyncadd (!%p2170_p2), %s1781_s29, 4294967168  ;;  %s1790_s14 = scalar_lea.sflag [#allocation10], %s1780_s5 }
0x1421   : > { %2435 = dma.done.wait (!%p2170_p2), %s1790_s14, 512  }
0x1422   : > { %2437 = vsyncadd (!%p2170_p2), %s1790_s14, 4294966784  ;;  %s27_s20 = sadd.s32 1, %s3038_s27   ;;  %s3041_s28 = sld [smem:[#allocation18_spill]] }
0x1423   : > { %p24_p5 = scmp.ge.s32.totalorder %s27_s20, 4   ;;  %s3042_s18 = sld [smem:[#allocation15_spill]] }
0x1424   : > { %s3043_s19 = sld [smem:[#allocation17_spill]]  ;;  %s3044_s15 = smov %s2444_s16 }
0x1425   : > { %s3045_s16 = smov %s2448_s17  ;;  %26 = sbr.rel (!%p24_p5) target bundleno = 12 (0xc), region = 121 }
0x1428   : > { %s3046_s17 = smov %s3041_s28 }
0x142c   :  { %1795 = vsyncpa [#allocation3], 1 }
0x142d   :  { %1797 = vsyncpa [#allocation3 + $0x1], 1 }
0x142e   :  { %1798 = vsyncpa [#allocation6], 1 }
0x142f   :  { %1800 = vsyncpa [#allocation6 + $0x1], 1 }
0x1430   :  { %1801 = vsyncpa [#allocation4], 1 }
0x1431   :  { %1803 = vsyncpa [#allocation4 + $0x1], 1 }
0x1432   :  { %1804 = vsyncpa [#allocation10], 1 }
0x1433   :  { %1806 = vsyncpa [#allocation10 + $0x1], 1 }

</bundles_post_ra>
